<compile_context>
chip_gen: v7x
topology: tpu7x:2x2x1
jax: 0.10.0
libtpu: 0.0.40
codegen_flags: <defaults>
</compile_context>

<pallas_src>
import functools

import jax
import jax.numpy as jnp
import numpy as np
from jax.experimental import pallas as pl
from jax.experimental.pallas import tpu as pltpu


def _lstm_sigmoid_kernel(x_ref, len_ref, user_ref, wih_ref, whh_ref, b_ref,
                         out_ref, *, num_layers, hidden_dim, seq_len):
    """Layer-outer / time-inner multi-layer LSTM recurrence + reduce + sigmoid."""
    T = seq_len
    B = x_ref.shape[1]
    H = hidden_dim
    wd = wih_ref.dtype                           # MXU operand dtype (bf16/f32)

    lengths = len_ref[...]                       # (B, 1) int32
    # pack_padded_sequence validity masks, computed once, reused by all layers.
    masks = [jnp.broadcast_to(t < lengths, (B, H)) for t in range(T)]

    # Layer-0 input: all timesteps flattened to rows for one batched matmul.
    x_flat = x_ref[...].reshape(T * B, x_ref.shape[2])           # (T*B, E)

    c_last = None
    for l in range(num_layers):                  # static unroll, layer-outer
        wih = wih_ref[l]                         # (E, 4H)  MXU dtype
        whh = whh_ref[l]                         # (H, 4H)  MXU dtype
        bias = b_ref[l]                          # (1, 4H)  f32
        # Input projection for ALL timesteps at once (off the serial path),
        # bias folded in here instead of a per-step broadcast.
        proj = jnp.dot(x_flat.astype(wd), wih,
                       preferred_element_type=jnp.float32) + bias   # (T*B, 4H)

        h = jnp.zeros((B, H), jnp.float32)
        c = jnp.zeros((B, H), jnp.float32)
        h_seq = []
        for t in range(T):                       # serial recurrence (static T)
            gates = proj[t * B:(t + 1) * B] + jnp.dot(
                h.astype(wd), whh, preferred_element_type=jnp.float32)  # (B,4H)
            # Gate columns are pre-permuted wrapper-side to [i, f, o, g]:
            sig = jax.nn.sigmoid(gates[:, :3 * H])        # one EUP pass (i,f,o)
            g_g = jnp.tanh(gates[:, 3 * H:])              # one EUP pass (g)
            i_g = sig[:, 0 * H:1 * H]
            f_g = sig[:, 1 * H:2 * H]
            o_g = sig[:, 2 * H:3 * H]
            c_new = f_g * c + i_g * g_g
            c_new = jnp.where(masks[t], c_new, c)         # freeze if t >= len
            h_new = o_g * jnp.tanh(c_new)
            h = jnp.where(masks[t], h_new, h)
            c = c_new
            h_seq.append(h)
        c_last = c
        if l + 1 < num_layers:
            x_flat = jnp.concatenate(h_seq, axis=0)        # (T*B, H) next input

    s = jnp.sum(user_ref[...] * c_last, axis=1, keepdims=True)      # (B, 1)
    out_ref[...] = jax.nn.sigmoid(s)


def _permute_gates_ifog(a):
    """PyTorch gate order (i, f, g, o) -> kernel order (i, f, o, g), last dim."""
    i, f, g, o = jnp.split(a, 4, axis=-1)
    return jnp.concatenate([i, f, o, g], axis=-1)


def lstm_net_forward(doc_title, user_ids, lengths, params,
                     *, mxu_dtype=jnp.bfloat16):
    """Embedding gathers + batch padding + gate permutation + pallas_call."""
    article_emb = params["article_embeddings"]   # (V_article, E)
    author_emb = params["author_embedding"]      # (V_author, H)
    wih_t = params["wih_t"]                      # (L, E, 4H) PyTorch gate order
    whh_t = params["whh_t"]                      # (L, H, 4H)
    bias = params["bias"]                        # (L, 1, 4H)  (b_ih + b_hh)
    H = params["hidden_dim"]
    L = params["lstm_layers"]

    # Embedding lookups (XLA gathers; see TODO for fusing into the kernel).
    text = article_emb[doc_title]                # (T, B, E)
    user = author_emb[user_ids]                  # (B, H)
    T, B, E = text.shape
    assert E == H, "stacked W_ih assumes embedding_dim == hidden_dim"
    assert user.shape[1] == H, "forward requires user_dim == hidden_dim"

    # Pad batch to a multiple of 8 so state/output vreg ops use full sublanes.
    B_pad = -(-B // 8) * 8
    pad = B_pad - B
    if pad:
        text = jnp.pad(text, ((0, 0), (0, pad), (0, 0)))
        user = jnp.pad(user, ((0, pad), (0, 0)))
        lengths = jnp.concatenate(
            [lengths.astype(jnp.int32), jnp.zeros((pad,), jnp.int32)])
    lengths_col = lengths.astype(jnp.int32)[:, None]              # (B_pad, 1)

    # Gate columns permuted to [i, f, o, g]; MXU operands cast to bf16 (f32 acc).
    wih = _permute_gates_ifog(wih_t).astype(mxu_dtype)            # (L, E, 4H)
    whh = _permute_gates_ifog(whh_t).astype(mxu_dtype)            # (L, H, 4H)
    b = _permute_gates_ifog(bias)                                 # (L, 1, 4H) f32

    kernel = functools.partial(_lstm_sigmoid_kernel,
                               num_layers=L, hidden_dim=H, seq_len=T)

    out = pl.pallas_call(
        kernel,
        out_shape=jax.ShapeDtypeStruct((B_pad, 1), jnp.float32),
        grid=(1,),
        in_specs=[
            pl.BlockSpec((T, B_pad, E), lambda i: (0, 0, 0)),       # text
            pl.BlockSpec((B_pad, 1), lambda i: (0, 0)),             # lengths
            pl.BlockSpec((B_pad, H), lambda i: (0, 0)),             # user emb
            pl.BlockSpec((L, E, 4 * H), lambda i: (0, 0, 0)),       # W_ih^T
            pl.BlockSpec((L, H, 4 * H), lambda i: (0, 0, 0)),       # W_hh^T
            pl.BlockSpec((L, 1, 4 * H), lambda i: (0, 0, 0)),       # bias
        ],
        out_specs=pl.BlockSpec((B_pad, 1), lambda i: (0, 0)),
        compiler_params=pltpu.CompilerParams(
            dimension_semantics=("arbitrary",)),
    )(text, lengths_col, user, wih, whh, b)
    # Drop padded rows (their sigmoid(0)=0.5 must not leak out as predictions).
    return out[:B, 0]


def _reference_forward(doc_title, user_ids, lengths, params):
    """Pure-JAX f32 reference with identical math (PyTorch gate order)."""
    article_emb = params["article_embeddings"]
    author_emb = params["author_embedding"]
    wih_t, whh_t, bias = params["wih_t"], params["whh_t"], params["bias"]
    H, L = params["hidden_dim"], params["lstm_layers"]

    text = article_emb[doc_title]
    user = author_emb[user_ids]
    T, B, _ = text.shape
    h = jnp.zeros((L, B, H), jnp.float32)
    c = jnp.zeros((L, B, H), jnp.float32)
    for t in range(T):
        inp = text[t]
        m = (t < lengths).astype(jnp.float32)[:, None]
        for l in range(L):
            gates = inp @ wih_t[l] + h[l] @ whh_t[l] + bias[l]
            i_g = jax.nn.sigmoid(gates[:, 0 * H:1 * H])
            f_g = jax.nn.sigmoid(gates[:, 1 * H:2 * H])
            g_g = jnp.tanh(gates[:, 2 * H:3 * H])
            o_g = jax.nn.sigmoid(gates[:, 3 * H:4 * H])
            c_new = f_g * c[l] + i_g * g_g
            h_new = o_g * jnp.tanh(c_new)
            h = h.at[l].set(m * h_new + (1.0 - m) * h[l])
            c = c.at[l].set(m * c_new + (1.0 - m) * c[l])
            inp = h[l]
    return jax.nn.sigmoid(jnp.sum(user * c[L - 1], axis=1))


def init_params(key, *, vocab_article, vocab_author, embedding_dim,
                hidden_dim, user_dim, lstm_layers):
    assert user_dim == hidden_dim, "forward requires user_dim == hidden_dim"
    assert embedding_dim == hidden_dim, "stacked weights assume E == H"
    ks = jax.random.split(key, 6)
    H = hidden_dim
    scale = 1.0 / np.sqrt(H)
    params = {
        "article_embeddings": jax.random.normal(
            ks[0], (vocab_article, embedding_dim), jnp.float32),
        "author_embedding": jax.random.uniform(
            ks[1], (vocab_author, user_dim), jnp.float32, 0.0, 0.01),
        # pre-transposed LSTM weights, PyTorch gate order (i, f, g, o)
        "wih_t": jax.random.uniform(
            ks[2], (lstm_layers, embedding_dim, 4 * H), jnp.float32, -scale, scale),
        "whh_t": jax.random.uniform(
            ks[3], (lstm_layers, H, 4 * H), jnp.float32, -scale, scale),
        "bias": (jax.random.uniform(
            ks[4], (lstm_layers, 1, 4 * H), jnp.float32, -scale, scale)
            + jax.random.uniform(
            ks[5], (lstm_layers, 1, 4 * H), jnp.float32, -scale, scale)),
        "hidden_dim": hidden_dim,
        "lstm_layers": lstm_layers,
    }
    return params


if __name__ == "__main__":
    # Small shapes consistent with the module: seq T=8, batch B=4,
    # embedding_dim = hidden_dim = user_dim = 32, lstm_layers = 3.
    T, B = 8, 4
    E = H = UD = 32
    L = 3
    V_ARTICLE, V_AUTHOR = 100, 20

    key = jax.random.PRNGKey(0)
    k_par, k_doc, k_user = jax.random.split(key, 3)

    params = init_params(k_par, vocab_article=V_ARTICLE, vocab_author=V_AUTHOR,
                         embedding_dim=E, hidden_dim=H, user_dim=UD,
                         lstm_layers=L)

    doc_title = jax.random.randint(k_doc, (T, B), 0, V_ARTICLE)   # (T, B) ids
    user_ids = jax.random.randint(k_user, (B,), 0, V_AUTHOR)      # (B,) ids
    lengths = jnp.array([8, 6, 5, 3], dtype=jnp.int32)            # sorted desc

    ref = jax.block_until_ready(
        _reference_forward(doc_title, user_ids, lengths, params))

    # Default path: bf16 MXU operands, f32 accumulation/state.
    out_bf16 = jax.block_until_ready(
        lstm_net_forward(doc_title, user_ids, lengths, params))
    np.testing.assert_allclose(np.asarray(out_bf16), np.asarray(ref),
                               rtol=2e-2, atol=2e-2)

    # f32-operand path: validates the kernel math (gate permutation, masking,
    # layer-outer restructuring) bit-tight against the f32 reference.
    out_f32 = jax.block_until_ready(
        lstm_net_forward(doc_title, user_ids, lengths, params,
                         mxu_dtype=jnp.float32))
    np.testing.assert_allclose(np.asarray(out_f32), np.asarray(ref),
                               rtol=1e-4, atol=1e-4)

    assert out_bf16.shape == (B,)
    print("KERNEL_OK")
</pallas_src>

<mosaic_0001>
module attributes {stable_mosaic.version = 11 : i64} {
  func.func @_lstm_sigmoid_kernel(%arg0: i32, %arg1: memref<8x8x32xf32, #tpu.memory_space<vmem>>, %arg2: memref<8x1xi32, #tpu.memory_space<vmem>>, %arg3: memref<8x32xf32, #tpu.memory_space<vmem>>, %arg4: memref<3x32x128xbf16, #tpu.memory_space<vmem>>, %arg5: memref<3x32x128xbf16, #tpu.memory_space<vmem>>, %arg6: memref<3x1x128xf32, #tpu.memory_space<vmem>>, %arg7: memref<8x1xf32, #tpu.memory_space<vmem>>) attributes {dimension_semantics = [#tpu.dimension_semantics<arbitrary>], iteration_bounds = array<i64: 1>, scalar_prefetch = 0 : i64, scratch_operands = 0 : i64, tpu.core_type = #tpu.core_type<tc>, window_params = [{pipeline_mode = #tpu.pipeline_mode<synchronous>, transform_indices = @transform_0, window_bounds = array<i64: 8, 8, 32>}, {pipeline_mode = #tpu.pipeline_mode<synchronous>, transform_indices = @transform_1, window_bounds = array<i64: 8, 1>}, {pipeline_mode = #tpu.pipeline_mode<synchronous>, transform_indices = @transform_2, window_bounds = array<i64: 8, 32>}, {pipeline_mode = #tpu.pipeline_mode<synchronous>, transform_indices = @transform_3, window_bounds = array<i64: 3, 32, 128>}, {pipeline_mode = #tpu.pipeline_mode<synchronous>, transform_indices = @transform_4, window_bounds = array<i64: 3, 32, 128>}, {pipeline_mode = #tpu.pipeline_mode<synchronous>, transform_indices = @transform_5, window_bounds = array<i64: 3, 1, 128>}, {pipeline_mode = #tpu.pipeline_mode<synchronous>, transform_indices = @transform_6, window_bounds = array<i64: 8, 1>}]} {
    %c0 = arith.constant 0 : index
    %c0_0 = arith.constant 0 : index
    %0 = vector.load %arg2[%c0, %c0_0] : memref<8x1xi32, #tpu.memory_space<vmem>>, vector<8x1xi32>
    %c0_i32 = arith.constant 0 : i32
    %1 = vector.broadcast %c0_i32 : i32 to vector<8x1xi32>
    %2 = arith.cmpi sgt, %0, %1 : vector<8x1xi32>
    %3 = vector.shape_cast %2 : vector<8x1xi1> to vector<8x1xi1>
    %4 = vector.broadcast %3 : vector<8x1xi1> to vector<8x32xi1>
    %c1_i32 = arith.constant 1 : i32
    %5 = vector.broadcast %c1_i32 : i32 to vector<8x1xi32>
    %6 = arith.cmpi sgt, %0, %5 : vector<8x1xi32>
    %7 = vector.shape_cast %6 : vector<8x1xi1> to vector<8x1xi1>
    %8 = vector.broadcast %7 : vector<8x1xi1> to vector<8x32xi1>
    %c2_i32 = arith.constant 2 : i32
    %9 = vector.broadcast %c2_i32 : i32 to vector<8x1xi32>
    %10 = arith.cmpi sgt, %0, %9 : vector<8x1xi32>
    %11 = vector.shape_cast %10 : vector<8x1xi1> to vector<8x1xi1>
    %12 = vector.broadcast %11 : vector<8x1xi1> to vector<8x32xi1>
    %c3_i32 = arith.constant 3 : i32
    %13 = vector.broadcast %c3_i32 : i32 to vector<8x1xi32>
    %14 = arith.cmpi sgt, %0, %13 : vector<8x1xi32>
    %15 = vector.shape_cast %14 : vector<8x1xi1> to vector<8x1xi1>
    %16 = vector.broadcast %15 : vector<8x1xi1> to vector<8x32xi1>
    %c4_i32 = arith.constant 4 : i32
    %17 = vector.broadcast %c4_i32 : i32 to vector<8x1xi32>
    %18 = arith.cmpi sgt, %0, %17 : vector<8x1xi32>
    %19 = vector.shape_cast %18 : vector<8x1xi1> to vector<8x1xi1>
    %20 = vector.broadcast %19 : vector<8x1xi1> to vector<8x32xi1>
    %c5_i32 = arith.constant 5 : i32
    %21 = vector.broadcast %c5_i32 : i32 to vector<8x1xi32>
    %22 = arith.cmpi sgt, %0, %21 : vector<8x1xi32>
    %23 = vector.shape_cast %22 : vector<8x1xi1> to vector<8x1xi1>
    %24 = vector.broadcast %23 : vector<8x1xi1> to vector<8x32xi1>
    %c6_i32 = arith.constant 6 : i32
    %25 = vector.broadcast %c6_i32 : i32 to vector<8x1xi32>
    %26 = arith.cmpi sgt, %0, %25 : vector<8x1xi32>
    %27 = vector.shape_cast %26 : vector<8x1xi1> to vector<8x1xi1>
    %28 = vector.broadcast %27 : vector<8x1xi1> to vector<8x32xi1>
    %c7_i32 = arith.constant 7 : i32
    %29 = vector.broadcast %c7_i32 : i32 to vector<8x1xi32>
    %30 = arith.cmpi sgt, %0, %29 : vector<8x1xi32>
    %31 = vector.shape_cast %30 : vector<8x1xi1> to vector<8x1xi1>
    %32 = vector.broadcast %31 : vector<8x1xi1> to vector<8x32xi1>
    %c0_1 = arith.constant 0 : index
    %c0_2 = arith.constant 0 : index
    %c0_3 = arith.constant 0 : index
    %33 = vector.load %arg1[%c0_1, %c0_2, %c0_3] : memref<8x8x32xf32, #tpu.memory_space<vmem>>, vector<8x8x32xf32>
    %34 = vector.shape_cast %33 : vector<8x8x32xf32> to vector<64x32xf32>
    %c0_4 = arith.constant 0 : index
    %c0_5 = arith.constant 0 : index
    %c0_6 = arith.constant 0 : index
    %35 = vector.load %arg4[%c0_4, %c0_5, %c0_6] : memref<3x32x128xbf16, #tpu.memory_space<vmem>>, vector<1x32x128xbf16>
    %36 = vector.shape_cast %35 : vector<1x32x128xbf16> to vector<32x128xbf16>
    %c0_7 = arith.constant 0 : index
    %c0_8 = arith.constant 0 : index
    %c0_9 = arith.constant 0 : index
    %37 = vector.load %arg5[%c0_7, %c0_8, %c0_9] : memref<3x32x128xbf16, #tpu.memory_space<vmem>>, vector<1x32x128xbf16>
    %38 = vector.shape_cast %37 : vector<1x32x128xbf16> to vector<32x128xbf16>
    %c0_10 = arith.constant 0 : index
    %c0_11 = arith.constant 0 : index
    %c0_12 = arith.constant 0 : index
    %39 = vector.load %arg6[%c0_10, %c0_11, %c0_12] : memref<3x1x128xf32, #tpu.memory_space<vmem>>, vector<1x1x128xf32>
    %40 = vector.shape_cast %39 : vector<1x1x128xf32> to vector<1x128xf32>
    %41 = arith.truncf %34 : vector<64x32xf32> to vector<64x32xbf16>
    %cst = arith.constant dense<0.000000e+00> : vector<64x128xf32>
    %42 = tpu.matmul %41, %36, %cst {dimension_numbers = #tpu.dot_dimension_numbers<[1], [0], [0], [1], [0, 0, 1, 1], [], []>} : vector<64x32xbf16>, vector<32x128xbf16>, vector<64x128xf32> -> vector<64x128xf32>
    %43 = vector.broadcast %40 : vector<1x128xf32> to vector<64x128xf32>
    %44 = arith.addf %42, %43 : vector<64x128xf32>
    %cst_13 = arith.constant 0.000000e+00 : f32
    %45 = vector.broadcast %cst_13 : f32 to vector<8x32xf32>
    %cst_14 = arith.constant 0.000000e+00 : f32
    %46 = vector.broadcast %cst_14 : f32 to vector<8x32xf32>
    %47 = vector.extract_strided_slice %44 {offsets = [0, 0], sizes = [8, 128], strides = [1, 1]} : vector<64x128xf32> to vector<8x128xf32>
    %48 = arith.truncf %45 : vector<8x32xf32> to vector<8x32xbf16>
    %cst_15 = arith.constant dense<0.000000e+00> : vector<8x128xf32>
    %49 = tpu.matmul %48, %38, %cst_15 {dimension_numbers = #tpu.dot_dimension_numbers<[1], [0], [0], [1], [0, 0, 1, 1], [], []>} : vector<8x32xbf16>, vector<32x128xbf16>, vector<8x128xf32> -> vector<8x128xf32>
    %50 = arith.addf %47, %49 : vector<8x128xf32>
    %51 = vector.extract_strided_slice %50 {offsets = [0, 0], sizes = [8, 96], strides = [1, 1]} : vector<8x128xf32> to vector<8x96xf32>
    %52 = arith.negf %51 : vector<8x96xf32>
    %53 = math.exp %52 : vector<8x96xf32>
    %cst_16 = arith.constant 1.000000e+00 : f32
    %54 = vector.broadcast %cst_16 : f32 to vector<8x96xf32>
    %55 = arith.addf %54, %53 : vector<8x96xf32>
    %56 = arith.divf %54, %55 : vector<8x96xf32>
    %57 = vector.extract_strided_slice %50 {offsets = [0, 96], sizes = [8, 32], strides = [1, 1]} : vector<8x128xf32> to vector<8x32xf32>
    %58 = math.tanh %57 : vector<8x32xf32>
    %59 = vector.extract_strided_slice %56 {offsets = [0, 0], sizes = [8, 32], strides = [1, 1]} : vector<8x96xf32> to vector<8x32xf32>
    %60 = vector.extract_strided_slice %56 {offsets = [0, 32], sizes = [8, 32], strides = [1, 1]} : vector<8x96xf32> to vector<8x32xf32>
    %61 = vector.extract_strided_slice %56 {offsets = [0, 64], sizes = [8, 32], strides = [1, 1]} : vector<8x96xf32> to vector<8x32xf32>
    %62 = arith.mulf %60, %46 : vector<8x32xf32>
    %63 = arith.mulf %59, %58 : vector<8x32xf32>
    %64 = arith.addf %62, %63 : vector<8x32xf32>
    %65 = arith.select %4, %64, %46 : vector<8x32xi1>, vector<8x32xf32>
    %66 = math.tanh %65 : vector<8x32xf32>
    %67 = arith.mulf %61, %66 : vector<8x32xf32>
    %68 = arith.select %4, %67, %45 : vector<8x32xi1>, vector<8x32xf32>
    %69 = vector.extract_strided_slice %44 {offsets = [8, 0], sizes = [8, 128], strides = [1, 1]} : vector<64x128xf32> to vector<8x128xf32>
    %70 = arith.truncf %68 : vector<8x32xf32> to vector<8x32xbf16>
    %cst_17 = arith.constant dense<0.000000e+00> : vector<8x128xf32>
    %71 = tpu.matmul %70, %38, %cst_17 {dimension_numbers = #tpu.dot_dimension_numbers<[1], [0], [0], [1], [0, 0, 1, 1], [], []>} : vector<8x32xbf16>, vector<32x128xbf16>, vector<8x128xf32> -> vector<8x128xf32>
    %72 = arith.addf %69, %71 : vector<8x128xf32>
    %73 = vector.extract_strided_slice %72 {offsets = [0, 0], sizes = [8, 96], strides = [1, 1]} : vector<8x128xf32> to vector<8x96xf32>
    %74 = arith.negf %73 : vector<8x96xf32>
    %75 = math.exp %74 : vector<8x96xf32>
    %cst_18 = arith.constant 1.000000e+00 : f32
    %76 = vector.broadcast %cst_18 : f32 to vector<8x96xf32>
    %77 = arith.addf %76, %75 : vector<8x96xf32>
    %78 = arith.divf %76, %77 : vector<8x96xf32>
    %79 = vector.extract_strided_slice %72 {offsets = [0, 96], sizes = [8, 32], strides = [1, 1]} : vector<8x128xf32> to vector<8x32xf32>
    %80 = math.tanh %79 : vector<8x32xf32>
    %81 = vector.extract_strided_slice %78 {offsets = [0, 0], sizes = [8, 32], strides = [1, 1]} : vector<8x96xf32> to vector<8x32xf32>
    %82 = vector.extract_strided_slice %78 {offsets = [0, 32], sizes = [8, 32], strides = [1, 1]} : vector<8x96xf32> to vector<8x32xf32>
    %83 = vector.extract_strided_slice %78 {offsets = [0, 64], sizes = [8, 32], strides = [1, 1]} : vector<8x96xf32> to vector<8x32xf32>
    %84 = arith.mulf %82, %65 : vector<8x32xf32>
    %85 = arith.mulf %81, %80 : vector<8x32xf32>
    %86 = arith.addf %84, %85 : vector<8x32xf32>
    %87 = arith.select %8, %86, %65 : vector<8x32xi1>, vector<8x32xf32>
    %88 = math.tanh %87 : vector<8x32xf32>
    %89 = arith.mulf %83, %88 : vector<8x32xf32>
    %90 = arith.select %8, %89, %68 : vector<8x32xi1>, vector<8x32xf32>
    %91 = vector.extract_strided_slice %44 {offsets = [16, 0], sizes = [8, 128], strides = [1, 1]} : vector<64x128xf32> to vector<8x128xf32>
    %92 = arith.truncf %90 : vector<8x32xf32> to vector<8x32xbf16>
    %cst_19 = arith.constant dense<0.000000e+00> : vector<8x128xf32>
    %93 = tpu.matmul %92, %38, %cst_19 {dimension_numbers = #tpu.dot_dimension_numbers<[1], [0], [0], [1], [0, 0, 1, 1], [], []>} : vector<8x32xbf16>, vector<32x128xbf16>, vector<8x128xf32> -> vector<8x128xf32>
    %94 = arith.addf %91, %93 : vector<8x128xf32>
    %95 = vector.extract_strided_slice %94 {offsets = [0, 0], sizes = [8, 96], strides = [1, 1]} : vector<8x128xf32> to vector<8x96xf32>
    %96 = arith.negf %95 : vector<8x96xf32>
    %97 = math.exp %96 : vector<8x96xf32>
    %cst_20 = arith.constant 1.000000e+00 : f32
    %98 = vector.broadcast %cst_20 : f32 to vector<8x96xf32>
    %99 = arith.addf %98, %97 : vector<8x96xf32>
    %100 = arith.divf %98, %99 : vector<8x96xf32>
    %101 = vector.extract_strided_slice %94 {offsets = [0, 96], sizes = [8, 32], strides = [1, 1]} : vector<8x128xf32> to vector<8x32xf32>
    %102 = math.tanh %101 : vector<8x32xf32>
    %103 = vector.extract_strided_slice %100 {offsets = [0, 0], sizes = [8, 32], strides = [1, 1]} : vector<8x96xf32> to vector<8x32xf32>
    %104 = vector.extract_strided_slice %100 {offsets = [0, 32], sizes = [8, 32], strides = [1, 1]} : vector<8x96xf32> to vector<8x32xf32>
    %105 = vector.extract_strided_slice %100 {offsets = [0, 64], sizes = [8, 32], strides = [1, 1]} : vector<8x96xf32> to vector<8x32xf32>
    %106 = arith.mulf %104, %87 : vector<8x32xf32>
    %107 = arith.mulf %103, %102 : vector<8x32xf32>
    %108 = arith.addf %106, %107 : vector<8x32xf32>
    %109 = arith.select %12, %108, %87 : vector<8x32xi1>, vector<8x32xf32>
    %110 = math.tanh %109 : vector<8x32xf32>
    %111 = arith.mulf %105, %110 : vector<8x32xf32>
    %112 = arith.select %12, %111, %90 : vector<8x32xi1>, vector<8x32xf32>
    %113 = vector.extract_strided_slice %44 {offsets = [24, 0], sizes = [8, 128], strides = [1, 1]} : vector<64x128xf32> to vector<8x128xf32>
    %114 = arith.truncf %112 : vector<8x32xf32> to vector<8x32xbf16>
    %cst_21 = arith.constant dense<0.000000e+00> : vector<8x128xf32>
    %115 = tpu.matmul %114, %38, %cst_21 {dimension_numbers = #tpu.dot_dimension_numbers<[1], [0], [0], [1], [0, 0, 1, 1], [], []>} : vector<8x32xbf16>, vector<32x128xbf16>, vector<8x128xf32> -> vector<8x128xf32>
    %116 = arith.addf %113, %115 : vector<8x128xf32>
    %117 = vector.extract_strided_slice %116 {offsets = [0, 0], sizes = [8, 96], strides = [1, 1]} : vector<8x128xf32> to vector<8x96xf32>
    %118 = arith.negf %117 : vector<8x96xf32>
    %119 = math.exp %118 : vector<8x96xf32>
    %cst_22 = arith.constant 1.000000e+00 : f32
    %120 = vector.broadcast %cst_22 : f32 to vector<8x96xf32>
    %121 = arith.addf %120, %119 : vector<8x96xf32>
    %122 = arith.divf %120, %121 : vector<8x96xf32>
    %123 = vector.extract_strided_slice %116 {offsets = [0, 96], sizes = [8, 32], strides = [1, 1]} : vector<8x128xf32> to vector<8x32xf32>
    %124 = math.tanh %123 : vector<8x32xf32>
    %125 = vector.extract_strided_slice %122 {offsets = [0, 0], sizes = [8, 32], strides = [1, 1]} : vector<8x96xf32> to vector<8x32xf32>
    %126 = vector.extract_strided_slice %122 {offsets = [0, 32], sizes = [8, 32], strides = [1, 1]} : vector<8x96xf32> to vector<8x32xf32>
    %127 = vector.extract_strided_slice %122 {offsets = [0, 64], sizes = [8, 32], strides = [1, 1]} : vector<8x96xf32> to vector<8x32xf32>
    %128 = arith.mulf %126, %109 : vector<8x32xf32>
    %129 = arith.mulf %125, %124 : vector<8x32xf32>
    %130 = arith.addf %128, %129 : vector<8x32xf32>
    %131 = arith.select %16, %130, %109 : vector<8x32xi1>, vector<8x32xf32>
    %132 = math.tanh %131 : vector<8x32xf32>
    %133 = arith.mulf %127, %132 : vector<8x32xf32>
    %134 = arith.select %16, %133, %112 : vector<8x32xi1>, vector<8x32xf32>
    %135 = vector.extract_strided_slice %44 {offsets = [32, 0], sizes = [8, 128], strides = [1, 1]} : vector<64x128xf32> to vector<8x128xf32>
    %136 = arith.truncf %134 : vector<8x32xf32> to vector<8x32xbf16>
    %cst_23 = arith.constant dense<0.000000e+00> : vector<8x128xf32>
    %137 = tpu.matmul %136, %38, %cst_23 {dimension_numbers = #tpu.dot_dimension_numbers<[1], [0], [0], [1], [0, 0, 1, 1], [], []>} : vector<8x32xbf16>, vector<32x128xbf16>, vector<8x128xf32> -> vector<8x128xf32>
    %138 = arith.addf %135, %137 : vector<8x128xf32>
    %139 = vector.extract_strided_slice %138 {offsets = [0, 0], sizes = [8, 96], strides = [1, 1]} : vector<8x128xf32> to vector<8x96xf32>
    %140 = arith.negf %139 : vector<8x96xf32>
    %141 = math.exp %140 : vector<8x96xf32>
    %cst_24 = arith.constant 1.000000e+00 : f32
    %142 = vector.broadcast %cst_24 : f32 to vector<8x96xf32>
    %143 = arith.addf %142, %141 : vector<8x96xf32>
    %144 = arith.divf %142, %143 : vector<8x96xf32>
    %145 = vector.extract_strided_slice %138 {offsets = [0, 96], sizes = [8, 32], strides = [1, 1]} : vector<8x128xf32> to vector<8x32xf32>
    %146 = math.tanh %145 : vector<8x32xf32>
    %147 = vector.extract_strided_slice %144 {offsets = [0, 0], sizes = [8, 32], strides = [1, 1]} : vector<8x96xf32> to vector<8x32xf32>
    %148 = vector.extract_strided_slice %144 {offsets = [0, 32], sizes = [8, 32], strides = [1, 1]} : vector<8x96xf32> to vector<8x32xf32>
    %149 = vector.extract_strided_slice %144 {offsets = [0, 64], sizes = [8, 32], strides = [1, 1]} : vector<8x96xf32> to vector<8x32xf32>
    %150 = arith.mulf %148, %131 : vector<8x32xf32>
    %151 = arith.mulf %147, %146 : vector<8x32xf32>
    %152 = arith.addf %150, %151 : vector<8x32xf32>
    %153 = arith.select %20, %152, %131 : vector<8x32xi1>, vector<8x32xf32>
    %154 = math.tanh %153 : vector<8x32xf32>
    %155 = arith.mulf %149, %154 : vector<8x32xf32>
    %156 = arith.select %20, %155, %134 : vector<8x32xi1>, vector<8x32xf32>
    %157 = vector.extract_strided_slice %44 {offsets = [40, 0], sizes = [8, 128], strides = [1, 1]} : vector<64x128xf32> to vector<8x128xf32>
    %158 = arith.truncf %156 : vector<8x32xf32> to vector<8x32xbf16>
    %cst_25 = arith.constant dense<0.000000e+00> : vector<8x128xf32>
    %159 = tpu.matmul %158, %38, %cst_25 {dimension_numbers = #tpu.dot_dimension_numbers<[1], [0], [0], [1], [0, 0, 1, 1], [], []>} : vector<8x32xbf16>, vector<32x128xbf16>, vector<8x128xf32> -> vector<8x128xf32>
    %160 = arith.addf %157, %159 : vector<8x128xf32>
    %161 = vector.extract_strided_slice %160 {offsets = [0, 0], sizes = [8, 96], strides = [1, 1]} : vector<8x128xf32> to vector<8x96xf32>
    %162 = arith.negf %161 : vector<8x96xf32>
    %163 = math.exp %162 : vector<8x96xf32>
    %cst_26 = arith.constant 1.000000e+00 : f32
    %164 = vector.broadcast %cst_26 : f32 to vector<8x96xf32>
    %165 = arith.addf %164, %163 : vector<8x96xf32>
    %166 = arith.divf %164, %165 : vector<8x96xf32>
    %167 = vector.extract_strided_slice %160 {offsets = [0, 96], sizes = [8, 32], strides = [1, 1]} : vector<8x128xf32> to vector<8x32xf32>
    %168 = math.tanh %167 : vector<8x32xf32>
    %169 = vector.extract_strided_slice %166 {offsets = [0, 0], sizes = [8, 32], strides = [1, 1]} : vector<8x96xf32> to vector<8x32xf32>
    %170 = vector.extract_strided_slice %166 {offsets = [0, 32], sizes = [8, 32], strides = [1, 1]} : vector<8x96xf32> to vector<8x32xf32>
    %171 = vector.extract_strided_slice %166 {offsets = [0, 64], sizes = [8, 32], strides = [1, 1]} : vector<8x96xf32> to vector<8x32xf32>
    %172 = arith.mulf %170, %153 : vector<8x32xf32>
    %173 = arith.mulf %169, %168 : vector<8x32xf32>
    %174 = arith.addf %172, %173 : vector<8x32xf32>
    %175 = arith.select %24, %174, %153 : vector<8x32xi1>, vector<8x32xf32>
    %176 = math.tanh %175 : vector<8x32xf32>
    %177 = arith.mulf %171, %176 : vector<8x32xf32>
    %178 = arith.select %24, %177, %156 : vector<8x32xi1>, vector<8x32xf32>
    %179 = vector.extract_strided_slice %44 {offsets = [48, 0], sizes = [8, 128], strides = [1, 1]} : vector<64x128xf32> to vector<8x128xf32>
    %180 = arith.truncf %178 : vector<8x32xf32> to vector<8x32xbf16>
    %cst_27 = arith.constant dense<0.000000e+00> : vector<8x128xf32>
    %181 = tpu.matmul %180, %38, %cst_27 {dimension_numbers = #tpu.dot_dimension_numbers<[1], [0], [0], [1], [0, 0, 1, 1], [], []>} : vector<8x32xbf16>, vector<32x128xbf16>, vector<8x128xf32> -> vector<8x128xf32>
    %182 = arith.addf %179, %181 : vector<8x128xf32>
    %183 = vector.extract_strided_slice %182 {offsets = [0, 0], sizes = [8, 96], strides = [1, 1]} : vector<8x128xf32> to vector<8x96xf32>
    %184 = arith.negf %183 : vector<8x96xf32>
    %185 = math.exp %184 : vector<8x96xf32>
    %cst_28 = arith.constant 1.000000e+00 : f32
    %186 = vector.broadcast %cst_28 : f32 to vector<8x96xf32>
    %187 = arith.addf %186, %185 : vector<8x96xf32>
    %188 = arith.divf %186, %187 : vector<8x96xf32>
    %189 = vector.extract_strided_slice %182 {offsets = [0, 96], sizes = [8, 32], strides = [1, 1]} : vector<8x128xf32> to vector<8x32xf32>
    %190 = math.tanh %189 : vector<8x32xf32>
    %191 = vector.extract_strided_slice %188 {offsets = [0, 0], sizes = [8, 32], strides = [1, 1]} : vector<8x96xf32> to vector<8x32xf32>
    %192 = vector.extract_strided_slice %188 {offsets = [0, 32], sizes = [8, 32], strides = [1, 1]} : vector<8x96xf32> to vector<8x32xf32>
    %193 = vector.extract_strided_slice %188 {offsets = [0, 64], sizes = [8, 32], strides = [1, 1]} : vector<8x96xf32> to vector<8x32xf32>
    %194 = arith.mulf %192, %175 : vector<8x32xf32>
    %195 = arith.mulf %191, %190 : vector<8x32xf32>
    %196 = arith.addf %194, %195 : vector<8x32xf32>
    %197 = arith.select %28, %196, %175 : vector<8x32xi1>, vector<8x32xf32>
    %198 = math.tanh %197 : vector<8x32xf32>
    %199 = arith.mulf %193, %198 : vector<8x32xf32>
    %200 = arith.select %28, %199, %178 : vector<8x32xi1>, vector<8x32xf32>
    %201 = vector.extract_strided_slice %44 {offsets = [56, 0], sizes = [8, 128], strides = [1, 1]} : vector<64x128xf32> to vector<8x128xf32>
    %202 = arith.truncf %200 : vector<8x32xf32> to vector<8x32xbf16>
    %cst_29 = arith.constant dense<0.000000e+00> : vector<8x128xf32>
    %203 = tpu.matmul %202, %38, %cst_29 {dimension_numbers = #tpu.dot_dimension_numbers<[1], [0], [0], [1], [0, 0, 1, 1], [], []>} : vector<8x32xbf16>, vector<32x128xbf16>, vector<8x128xf32> -> vector<8x128xf32>
    %204 = arith.addf %201, %203 : vector<8x128xf32>
    %205 = vector.extract_strided_slice %204 {offsets = [0, 0], sizes = [8, 96], strides = [1, 1]} : vector<8x128xf32> to vector<8x96xf32>
    %206 = arith.negf %205 : vector<8x96xf32>
    %207 = math.exp %206 : vector<8x96xf32>
    %cst_30 = arith.constant 1.000000e+00 : f32
    %208 = vector.broadcast %cst_30 : f32 to vector<8x96xf32>
    %209 = arith.addf %208, %207 : vector<8x96xf32>
    %210 = arith.divf %208, %209 : vector<8x96xf32>
    %211 = vector.extract_strided_slice %204 {offsets = [0, 96], sizes = [8, 32], strides = [1, 1]} : vector<8x128xf32> to vector<8x32xf32>
    %212 = math.tanh %211 : vector<8x32xf32>
    %213 = vector.extract_strided_slice %210 {offsets = [0, 0], sizes = [8, 32], strides = [1, 1]} : vector<8x96xf32> to vector<8x32xf32>
    %214 = vector.extract_strided_slice %210 {offsets = [0, 32], sizes = [8, 32], strides = [1, 1]} : vector<8x96xf32> to vector<8x32xf32>
    %215 = vector.extract_strided_slice %210 {offsets = [0, 64], sizes = [8, 32], strides = [1, 1]} : vector<8x96xf32> to vector<8x32xf32>
    %216 = arith.mulf %214, %197 : vector<8x32xf32>
    %217 = arith.mulf %213, %212 : vector<8x32xf32>
    %218 = arith.addf %216, %217 : vector<8x32xf32>
    %219 = arith.select %32, %218, %197 : vector<8x32xi1>, vector<8x32xf32>
    %220 = math.tanh %219 : vector<8x32xf32>
    %221 = arith.mulf %215, %220 : vector<8x32xf32>
    %222 = arith.select %32, %221, %200 : vector<8x32xi1>, vector<8x32xf32>
    %223 = tpu.concatenate %68, %90, %112, %134, %156, %178, %200, %222 in 0 : vector<8x32xf32>, vector<8x32xf32>, vector<8x32xf32>, vector<8x32xf32>, vector<8x32xf32>, vector<8x32xf32>, vector<8x32xf32>, vector<8x32xf32> -> vector<64x32xf32>
    %c1 = arith.constant 1 : index
    %c0_31 = arith.constant 0 : index
    %c0_32 = arith.constant 0 : index
    %224 = vector.load %arg4[%c1, %c0_31, %c0_32] : memref<3x32x128xbf16, #tpu.memory_space<vmem>>, vector<1x32x128xbf16>
    %225 = vector.shape_cast %224 : vector<1x32x128xbf16> to vector<32x128xbf16>
    %c1_33 = arith.constant 1 : index
    %c0_34 = arith.constant 0 : index
    %c0_35 = arith.constant 0 : index
    %226 = vector.load %arg5[%c1_33, %c0_34, %c0_35] : memref<3x32x128xbf16, #tpu.memory_space<vmem>>, vector<1x32x128xbf16>
    %227 = vector.shape_cast %226 : vector<1x32x128xbf16> to vector<32x128xbf16>
    %c1_36 = arith.constant 1 : index
    %c0_37 = arith.constant 0 : index
    %c0_38 = arith.constant 0 : index
    %228 = vector.load %arg6[%c1_36, %c0_37, %c0_38] : memref<3x1x128xf32, #tpu.memory_space<vmem>>, vector<1x1x128xf32>
    %229 = vector.shape_cast %228 : vector<1x1x128xf32> to vector<1x128xf32>
    %230 = arith.truncf %223 : vector<64x32xf32> to vector<64x32xbf16>
    %cst_39 = arith.constant dense<0.000000e+00> : vector<64x128xf32>
    %231 = tpu.matmul %230, %225, %cst_39 {dimension_numbers = #tpu.dot_dimension_numbers<[1], [0], [0], [1], [0, 0, 1, 1], [], []>} : vector<64x32xbf16>, vector<32x128xbf16>, vector<64x128xf32> -> vector<64x128xf32>
    %232 = vector.broadcast %229 : vector<1x128xf32> to vector<64x128xf32>
    %233 = arith.addf %231, %232 : vector<64x128xf32>
    %cst_40 = arith.constant 0.000000e+00 : f32
    %234 = vector.broadcast %cst_40 : f32 to vector<8x32xf32>
    %cst_41 = arith.constant 0.000000e+00 : f32
    %235 = vector.broadcast %cst_41 : f32 to vector<8x32xf32>
    %236 = vector.extract_strided_slice %233 {offsets = [0, 0], sizes = [8, 128], strides = [1, 1]} : vector<64x128xf32> to vector<8x128xf32>
    %237 = arith.truncf %234 : vector<8x32xf32> to vector<8x32xbf16>
    %cst_42 = arith.constant dense<0.000000e+00> : vector<8x128xf32>
    %238 = tpu.matmul %237, %227, %cst_42 {dimension_numbers = #tpu.dot_dimension_numbers<[1], [0], [0], [1], [0, 0, 1, 1], [], []>} : vector<8x32xbf16>, vector<32x128xbf16>, vector<8x128xf32> -> vector<8x128xf32>
    %239 = arith.addf %236, %238 : vector<8x128xf32>
    %240 = vector.extract_strided_slice %239 {offsets = [0, 0], sizes = [8, 96], strides = [1, 1]} : vector<8x128xf32> to vector<8x96xf32>
    %241 = arith.negf %240 : vector<8x96xf32>
    %242 = math.exp %241 : vector<8x96xf32>
    %cst_43 = arith.constant 1.000000e+00 : f32
    %243 = vector.broadcast %cst_43 : f32 to vector<8x96xf32>
    %244 = arith.addf %243, %242 : vector<8x96xf32>
    %245 = arith.divf %243, %244 : vector<8x96xf32>
    %246 = vector.extract_strided_slice %239 {offsets = [0, 96], sizes = [8, 32], strides = [1, 1]} : vector<8x128xf32> to vector<8x32xf32>
    %247 = math.tanh %246 : vector<8x32xf32>
    %248 = vector.extract_strided_slice %245 {offsets = [0, 0], sizes = [8, 32], strides = [1, 1]} : vector<8x96xf32> to vector<8x32xf32>
    %249 = vector.extract_strided_slice %245 {offsets = [0, 32], sizes = [8, 32], strides = [1, 1]} : vector<8x96xf32> to vector<8x32xf32>
    %250 = vector.extract_strided_slice %245 {offsets = [0, 64], sizes = [8, 32], strides = [1, 1]} : vector<8x96xf32> to vector<8x32xf32>
    %251 = arith.mulf %249, %235 : vector<8x32xf32>
    %252 = arith.mulf %248, %247 : vector<8x32xf32>
    %253 = arith.addf %251, %252 : vector<8x32xf32>
    %254 = arith.select %4, %253, %235 : vector<8x32xi1>, vector<8x32xf32>
    %255 = math.tanh %254 : vector<8x32xf32>
    %256 = arith.mulf %250, %255 : vector<8x32xf32>
    %257 = arith.select %4, %256, %234 : vector<8x32xi1>, vector<8x32xf32>
    %258 = vector.extract_strided_slice %233 {offsets = [8, 0], sizes = [8, 128], strides = [1, 1]} : vector<64x128xf32> to vector<8x128xf32>
    %259 = arith.truncf %257 : vector<8x32xf32> to vector<8x32xbf16>
    %cst_44 = arith.constant dense<0.000000e+00> : vector<8x128xf32>
    %260 = tpu.matmul %259, %227, %cst_44 {dimension_numbers = #tpu.dot_dimension_numbers<[1], [0], [0], [1], [0, 0, 1, 1], [], []>} : vector<8x32xbf16>, vector<32x128xbf16>, vector<8x128xf32> -> vector<8x128xf32>
    %261 = arith.addf %258, %260 : vector<8x128xf32>
    %262 = vector.extract_strided_slice %261 {offsets = [0, 0], sizes = [8, 96], strides = [1, 1]} : vector<8x128xf32> to vector<8x96xf32>
    %263 = arith.negf %262 : vector<8x96xf32>
    %264 = math.exp %263 : vector<8x96xf32>
    %cst_45 = arith.constant 1.000000e+00 : f32
    %265 = vector.broadcast %cst_45 : f32 to vector<8x96xf32>
    %266 = arith.addf %265, %264 : vector<8x96xf32>
    %267 = arith.divf %265, %266 : vector<8x96xf32>
    %268 = vector.extract_strided_slice %261 {offsets = [0, 96], sizes = [8, 32], strides = [1, 1]} : vector<8x128xf32> to vector<8x32xf32>
    %269 = math.tanh %268 : vector<8x32xf32>
    %270 = vector.extract_strided_slice %267 {offsets = [0, 0], sizes = [8, 32], strides = [1, 1]} : vector<8x96xf32> to vector<8x32xf32>
    %271 = vector.extract_strided_slice %267 {offsets = [0, 32], sizes = [8, 32], strides = [1, 1]} : vector<8x96xf32> to vector<8x32xf32>
    %272 = vector.extract_strided_slice %267 {offsets = [0, 64], sizes = [8, 32], strides = [1, 1]} : vector<8x96xf32> to vector<8x32xf32>
    %273 = arith.mulf %271, %254 : vector<8x32xf32>
    %274 = arith.mulf %270, %269 : vector<8x32xf32>
    %275 = arith.addf %273, %274 : vector<8x32xf32>
    %276 = arith.select %8, %275, %254 : vector<8x32xi1>, vector<8x32xf32>
    %277 = math.tanh %276 : vector<8x32xf32>
    %278 = arith.mulf %272, %277 : vector<8x32xf32>
    %279 = arith.select %8, %278, %257 : vector<8x32xi1>, vector<8x32xf32>
    %280 = vector.extract_strided_slice %233 {offsets = [16, 0], sizes = [8, 128], strides = [1, 1]} : vector<64x128xf32> to vector<8x128xf32>
    %281 = arith.truncf %279 : vector<8x32xf32> to vector<8x32xbf16>
    %cst_46 = arith.constant dense<0.000000e+00> : vector<8x128xf32>
    %282 = tpu.matmul %281, %227, %cst_46 {dimension_numbers = #tpu.dot_dimension_numbers<[1], [0], [0], [1], [0, 0, 1, 1], [], []>} : vector<8x32xbf16>, vector<32x128xbf16>, vector<8x128xf32> -> vector<8x128xf32>
    %283 = arith.addf %280, %282 : vector<8x128xf32>
    %284 = vector.extract_strided_slice %283 {offsets = [0, 0], sizes = [8, 96], strides = [1, 1]} : vector<8x128xf32> to vector<8x96xf32>
    %285 = arith.negf %284 : vector<8x96xf32>
    %286 = math.exp %285 : vector<8x96xf32>
    %cst_47 = arith.constant 1.000000e+00 : f32
    %287 = vector.broadcast %cst_47 : f32 to vector<8x96xf32>
    %288 = arith.addf %287, %286 : vector<8x96xf32>
    %289 = arith.divf %287, %288 : vector<8x96xf32>
    %290 = vector.extract_strided_slice %283 {offsets = [0, 96], sizes = [8, 32], strides = [1, 1]} : vector<8x128xf32> to vector<8x32xf32>
    %291 = math.tanh %290 : vector<8x32xf32>
    %292 = vector.extract_strided_slice %289 {offsets = [0, 0], sizes = [8, 32], strides = [1, 1]} : vector<8x96xf32> to vector<8x32xf32>
    %293 = vector.extract_strided_slice %289 {offsets = [0, 32], sizes = [8, 32], strides = [1, 1]} : vector<8x96xf32> to vector<8x32xf32>
    %294 = vector.extract_strided_slice %289 {offsets = [0, 64], sizes = [8, 32], strides = [1, 1]} : vector<8x96xf32> to vector<8x32xf32>
    %295 = arith.mulf %293, %276 : vector<8x32xf32>
    %296 = arith.mulf %292, %291 : vector<8x32xf32>
    %297 = arith.addf %295, %296 : vector<8x32xf32>
    %298 = arith.select %12, %297, %276 : vector<8x32xi1>, vector<8x32xf32>
    %299 = math.tanh %298 : vector<8x32xf32>
    %300 = arith.mulf %294, %299 : vector<8x32xf32>
    %301 = arith.select %12, %300, %279 : vector<8x32xi1>, vector<8x32xf32>
    %302 = vector.extract_strided_slice %233 {offsets = [24, 0], sizes = [8, 128], strides = [1, 1]} : vector<64x128xf32> to vector<8x128xf32>
    %303 = arith.truncf %301 : vector<8x32xf32> to vector<8x32xbf16>
    %cst_48 = arith.constant dense<0.000000e+00> : vector<8x128xf32>
    %304 = tpu.matmul %303, %227, %cst_48 {dimension_numbers = #tpu.dot_dimension_numbers<[1], [0], [0], [1], [0, 0, 1, 1], [], []>} : vector<8x32xbf16>, vector<32x128xbf16>, vector<8x128xf32> -> vector<8x128xf32>
    %305 = arith.addf %302, %304 : vector<8x128xf32>
    %306 = vector.extract_strided_slice %305 {offsets = [0, 0], sizes = [8, 96], strides = [1, 1]} : vector<8x128xf32> to vector<8x96xf32>
    %307 = arith.negf %306 : vector<8x96xf32>
    %308 = math.exp %307 : vector<8x96xf32>
    %cst_49 = arith.constant 1.000000e+00 : f32
    %309 = vector.broadcast %cst_49 : f32 to vector<8x96xf32>
    %310 = arith.addf %309, %308 : vector<8x96xf32>
    %311 = arith.divf %309, %310 : vector<8x96xf32>
    %312 = vector.extract_strided_slice %305 {offsets = [0, 96], sizes = [8, 32], strides = [1, 1]} : vector<8x128xf32> to vector<8x32xf32>
    %313 = math.tanh %312 : vector<8x32xf32>
    %314 = vector.extract_strided_slice %311 {offsets = [0, 0], sizes = [8, 32], strides = [1, 1]} : vector<8x96xf32> to vector<8x32xf32>
    %315 = vector.extract_strided_slice %311 {offsets = [0, 32], sizes = [8, 32], strides = [1, 1]} : vector<8x96xf32> to vector<8x32xf32>
    %316 = vector.extract_strided_slice %311 {offsets = [0, 64], sizes = [8, 32], strides = [1, 1]} : vector<8x96xf32> to vector<8x32xf32>
    %317 = arith.mulf %315, %298 : vector<8x32xf32>
    %318 = arith.mulf %314, %313 : vector<8x32xf32>
    %319 = arith.addf %317, %318 : vector<8x32xf32>
    %320 = arith.select %16, %319, %298 : vector<8x32xi1>, vector<8x32xf32>
    %321 = math.tanh %320 : vector<8x32xf32>
    %322 = arith.mulf %316, %321 : vector<8x32xf32>
    %323 = arith.select %16, %322, %301 : vector<8x32xi1>, vector<8x32xf32>
    %324 = vector.extract_strided_slice %233 {offsets = [32, 0], sizes = [8, 128], strides = [1, 1]} : vector<64x128xf32> to vector<8x128xf32>
    %325 = arith.truncf %323 : vector<8x32xf32> to vector<8x32xbf16>
    %cst_50 = arith.constant dense<0.000000e+00> : vector<8x128xf32>
    %326 = tpu.matmul %325, %227, %cst_50 {dimension_numbers = #tpu.dot_dimension_numbers<[1], [0], [0], [1], [0, 0, 1, 1], [], []>} : vector<8x32xbf16>, vector<32x128xbf16>, vector<8x128xf32> -> vector<8x128xf32>
    %327 = arith.addf %324, %326 : vector<8x128xf32>
    %328 = vector.extract_strided_slice %327 {offsets = [0, 0], sizes = [8, 96], strides = [1, 1]} : vector<8x128xf32> to vector<8x96xf32>
    %329 = arith.negf %328 : vector<8x96xf32>
    %330 = math.exp %329 : vector<8x96xf32>
    %cst_51 = arith.constant 1.000000e+00 : f32
    %331 = vector.broadcast %cst_51 : f32 to vector<8x96xf32>
    %332 = arith.addf %331, %330 : vector<8x96xf32>
    %333 = arith.divf %331, %332 : vector<8x96xf32>
    %334 = vector.extract_strided_slice %327 {offsets = [0, 96], sizes = [8, 32], strides = [1, 1]} : vector<8x128xf32> to vector<8x32xf32>
    %335 = math.tanh %334 : vector<8x32xf32>
    %336 = vector.extract_strided_slice %333 {offsets = [0, 0], sizes = [8, 32], strides = [1, 1]} : vector<8x96xf32> to vector<8x32xf32>
    %337 = vector.extract_strided_slice %333 {offsets = [0, 32], sizes = [8, 32], strides = [1, 1]} : vector<8x96xf32> to vector<8x32xf32>
    %338 = vector.extract_strided_slice %333 {offsets = [0, 64], sizes = [8, 32], strides = [1, 1]} : vector<8x96xf32> to vector<8x32xf32>
    %339 = arith.mulf %337, %320 : vector<8x32xf32>
    %340 = arith.mulf %336, %335 : vector<8x32xf32>
    %341 = arith.addf %339, %340 : vector<8x32xf32>
    %342 = arith.select %20, %341, %320 : vector<8x32xi1>, vector<8x32xf32>
    %343 = math.tanh %342 : vector<8x32xf32>
    %344 = arith.mulf %338, %343 : vector<8x32xf32>
    %345 = arith.select %20, %344, %323 : vector<8x32xi1>, vector<8x32xf32>
    %346 = vector.extract_strided_slice %233 {offsets = [40, 0], sizes = [8, 128], strides = [1, 1]} : vector<64x128xf32> to vector<8x128xf32>
    %347 = arith.truncf %345 : vector<8x32xf32> to vector<8x32xbf16>
    %cst_52 = arith.constant dense<0.000000e+00> : vector<8x128xf32>
    %348 = tpu.matmul %347, %227, %cst_52 {dimension_numbers = #tpu.dot_dimension_numbers<[1], [0], [0], [1], [0, 0, 1, 1], [], []>} : vector<8x32xbf16>, vector<32x128xbf16>, vector<8x128xf32> -> vector<8x128xf32>
    %349 = arith.addf %346, %348 : vector<8x128xf32>
    %350 = vector.extract_strided_slice %349 {offsets = [0, 0], sizes = [8, 96], strides = [1, 1]} : vector<8x128xf32> to vector<8x96xf32>
    %351 = arith.negf %350 : vector<8x96xf32>
    %352 = math.exp %351 : vector<8x96xf32>
    %cst_53 = arith.constant 1.000000e+00 : f32
    %353 = vector.broadcast %cst_53 : f32 to vector<8x96xf32>
    %354 = arith.addf %353, %352 : vector<8x96xf32>
    %355 = arith.divf %353, %354 : vector<8x96xf32>
    %356 = vector.extract_strided_slice %349 {offsets = [0, 96], sizes = [8, 32], strides = [1, 1]} : vector<8x128xf32> to vector<8x32xf32>
    %357 = math.tanh %356 : vector<8x32xf32>
    %358 = vector.extract_strided_slice %355 {offsets = [0, 0], sizes = [8, 32], strides = [1, 1]} : vector<8x96xf32> to vector<8x32xf32>
    %359 = vector.extract_strided_slice %355 {offsets = [0, 32], sizes = [8, 32], strides = [1, 1]} : vector<8x96xf32> to vector<8x32xf32>
    %360 = vector.extract_strided_slice %355 {offsets = [0, 64], sizes = [8, 32], strides = [1, 1]} : vector<8x96xf32> to vector<8x32xf32>
    %361 = arith.mulf %359, %342 : vector<8x32xf32>
    %362 = arith.mulf %358, %357 : vector<8x32xf32>
    %363 = arith.addf %361, %362 : vector<8x32xf32>
    %364 = arith.select %24, %363, %342 : vector<8x32xi1>, vector<8x32xf32>
    %365 = math.tanh %364 : vector<8x32xf32>
    %366 = arith.mulf %360, %365 : vector<8x32xf32>
    %367 = arith.select %24, %366, %345 : vector<8x32xi1>, vector<8x32xf32>
    %368 = vector.extract_strided_slice %233 {offsets = [48, 0], sizes = [8, 128], strides = [1, 1]} : vector<64x128xf32> to vector<8x128xf32>
    %369 = arith.truncf %367 : vector<8x32xf32> to vector<8x32xbf16>
    %cst_54 = arith.constant dense<0.000000e+00> : vector<8x128xf32>
    %370 = tpu.matmul %369, %227, %cst_54 {dimension_numbers = #tpu.dot_dimension_numbers<[1], [0], [0], [1], [0, 0, 1, 1], [], []>} : vector<8x32xbf16>, vector<32x128xbf16>, vector<8x128xf32> -> vector<8x128xf32>
    %371 = arith.addf %368, %370 : vector<8x128xf32>
    %372 = vector.extract_strided_slice %371 {offsets = [0, 0], sizes = [8, 96], strides = [1, 1]} : vector<8x128xf32> to vector<8x96xf32>
    %373 = arith.negf %372 : vector<8x96xf32>
    %374 = math.exp %373 : vector<8x96xf32>
    %cst_55 = arith.constant 1.000000e+00 : f32
    %375 = vector.broadcast %cst_55 : f32 to vector<8x96xf32>
    %376 = arith.addf %375, %374 : vector<8x96xf32>
    %377 = arith.divf %375, %376 : vector<8x96xf32>
    %378 = vector.extract_strided_slice %371 {offsets = [0, 96], sizes = [8, 32], strides = [1, 1]} : vector<8x128xf32> to vector<8x32xf32>
    %379 = math.tanh %378 : vector<8x32xf32>
    %380 = vector.extract_strided_slice %377 {offsets = [0, 0], sizes = [8, 32], strides = [1, 1]} : vector<8x96xf32> to vector<8x32xf32>
    %381 = vector.extract_strided_slice %377 {offsets = [0, 32], sizes = [8, 32], strides = [1, 1]} : vector<8x96xf32> to vector<8x32xf32>
    %382 = vector.extract_strided_slice %377 {offsets = [0, 64], sizes = [8, 32], strides = [1, 1]} : vector<8x96xf32> to vector<8x32xf32>
    %383 = arith.mulf %381, %364 : vector<8x32xf32>
    %384 = arith.mulf %380, %379 : vector<8x32xf32>
    %385 = arith.addf %383, %384 : vector<8x32xf32>
    %386 = arith.select %28, %385, %364 : vector<8x32xi1>, vector<8x32xf32>
    %387 = math.tanh %386 : vector<8x32xf32>
    %388 = arith.mulf %382, %387 : vector<8x32xf32>
    %389 = arith.select %28, %388, %367 : vector<8x32xi1>, vector<8x32xf32>
    %390 = vector.extract_strided_slice %233 {offsets = [56, 0], sizes = [8, 128], strides = [1, 1]} : vector<64x128xf32> to vector<8x128xf32>
    %391 = arith.truncf %389 : vector<8x32xf32> to vector<8x32xbf16>
    %cst_56 = arith.constant dense<0.000000e+00> : vector<8x128xf32>
    %392 = tpu.matmul %391, %227, %cst_56 {dimension_numbers = #tpu.dot_dimension_numbers<[1], [0], [0], [1], [0, 0, 1, 1], [], []>} : vector<8x32xbf16>, vector<32x128xbf16>, vector<8x128xf32> -> vector<8x128xf32>
    %393 = arith.addf %390, %392 : vector<8x128xf32>
    %394 = vector.extract_strided_slice %393 {offsets = [0, 0], sizes = [8, 96], strides = [1, 1]} : vector<8x128xf32> to vector<8x96xf32>
    %395 = arith.negf %394 : vector<8x96xf32>
    %396 = math.exp %395 : vector<8x96xf32>
    %cst_57 = arith.constant 1.000000e+00 : f32
    %397 = vector.broadcast %cst_57 : f32 to vector<8x96xf32>
    %398 = arith.addf %397, %396 : vector<8x96xf32>
    %399 = arith.divf %397, %398 : vector<8x96xf32>
    %400 = vector.extract_strided_slice %393 {offsets = [0, 96], sizes = [8, 32], strides = [1, 1]} : vector<8x128xf32> to vector<8x32xf32>
    %401 = math.tanh %400 : vector<8x32xf32>
    %402 = vector.extract_strided_slice %399 {offsets = [0, 0], sizes = [8, 32], strides = [1, 1]} : vector<8x96xf32> to vector<8x32xf32>
    %403 = vector.extract_strided_slice %399 {offsets = [0, 32], sizes = [8, 32], strides = [1, 1]} : vector<8x96xf32> to vector<8x32xf32>
    %404 = vector.extract_strided_slice %399 {offsets = [0, 64], sizes = [8, 32], strides = [1, 1]} : vector<8x96xf32> to vector<8x32xf32>
    %405 = arith.mulf %403, %386 : vector<8x32xf32>
    %406 = arith.mulf %402, %401 : vector<8x32xf32>
    %407 = arith.addf %405, %406 : vector<8x32xf32>
    %408 = arith.select %32, %407, %386 : vector<8x32xi1>, vector<8x32xf32>
    %409 = math.tanh %408 : vector<8x32xf32>
    %410 = arith.mulf %404, %409 : vector<8x32xf32>
    %411 = arith.select %32, %410, %389 : vector<8x32xi1>, vector<8x32xf32>
    %412 = tpu.concatenate %257, %279, %301, %323, %345, %367, %389, %411 in 0 : vector<8x32xf32>, vector<8x32xf32>, vector<8x32xf32>, vector<8x32xf32>, vector<8x32xf32>, vector<8x32xf32>, vector<8x32xf32>, vector<8x32xf32> -> vector<64x32xf32>
    %c2 = arith.constant 2 : index
    %c0_58 = arith.constant 0 : index
    %c0_59 = arith.constant 0 : index
    %413 = vector.load %arg4[%c2, %c0_58, %c0_59] : memref<3x32x128xbf16, #tpu.memory_space<vmem>>, vector<1x32x128xbf16>
    %414 = vector.shape_cast %413 : vector<1x32x128xbf16> to vector<32x128xbf16>
    %c2_60 = arith.constant 2 : index
    %c0_61 = arith.constant 0 : index
    %c0_62 = arith.constant 0 : index
    %415 = vector.load %arg5[%c2_60, %c0_61, %c0_62] : memref<3x32x128xbf16, #tpu.memory_space<vmem>>, vector<1x32x128xbf16>
    %416 = vector.shape_cast %415 : vector<1x32x128xbf16> to vector<32x128xbf16>
    %c2_63 = arith.constant 2 : index
    %c0_64 = arith.constant 0 : index
    %c0_65 = arith.constant 0 : index
    %417 = vector.load %arg6[%c2_63, %c0_64, %c0_65] : memref<3x1x128xf32, #tpu.memory_space<vmem>>, vector<1x1x128xf32>
    %418 = vector.shape_cast %417 : vector<1x1x128xf32> to vector<1x128xf32>
    %419 = arith.truncf %412 : vector<64x32xf32> to vector<64x32xbf16>
    %cst_66 = arith.constant dense<0.000000e+00> : vector<64x128xf32>
    %420 = tpu.matmul %419, %414, %cst_66 {dimension_numbers = #tpu.dot_dimension_numbers<[1], [0], [0], [1], [0, 0, 1, 1], [], []>} : vector<64x32xbf16>, vector<32x128xbf16>, vector<64x128xf32> -> vector<64x128xf32>
    %421 = vector.broadcast %418 : vector<1x128xf32> to vector<64x128xf32>
    %422 = arith.addf %420, %421 : vector<64x128xf32>
    %cst_67 = arith.constant 0.000000e+00 : f32
    %423 = vector.broadcast %cst_67 : f32 to vector<8x32xf32>
    %cst_68 = arith.constant 0.000000e+00 : f32
    %424 = vector.broadcast %cst_68 : f32 to vector<8x32xf32>
    %425 = vector.extract_strided_slice %422 {offsets = [0, 0], sizes = [8, 128], strides = [1, 1]} : vector<64x128xf32> to vector<8x128xf32>
    %426 = arith.truncf %423 : vector<8x32xf32> to vector<8x32xbf16>
    %cst_69 = arith.constant dense<0.000000e+00> : vector<8x128xf32>
    %427 = tpu.matmul %426, %416, %cst_69 {dimension_numbers = #tpu.dot_dimension_numbers<[1], [0], [0], [1], [0, 0, 1, 1], [], []>} : vector<8x32xbf16>, vector<32x128xbf16>, vector<8x128xf32> -> vector<8x128xf32>
    %428 = arith.addf %425, %427 : vector<8x128xf32>
    %429 = vector.extract_strided_slice %428 {offsets = [0, 0], sizes = [8, 96], strides = [1, 1]} : vector<8x128xf32> to vector<8x96xf32>
    %430 = arith.negf %429 : vector<8x96xf32>
    %431 = math.exp %430 : vector<8x96xf32>
    %cst_70 = arith.constant 1.000000e+00 : f32
    %432 = vector.broadcast %cst_70 : f32 to vector<8x96xf32>
    %433 = arith.addf %432, %431 : vector<8x96xf32>
    %434 = arith.divf %432, %433 : vector<8x96xf32>
    %435 = vector.extract_strided_slice %428 {offsets = [0, 96], sizes = [8, 32], strides = [1, 1]} : vector<8x128xf32> to vector<8x32xf32>
    %436 = math.tanh %435 : vector<8x32xf32>
    %437 = vector.extract_strided_slice %434 {offsets = [0, 0], sizes = [8, 32], strides = [1, 1]} : vector<8x96xf32> to vector<8x32xf32>
    %438 = vector.extract_strided_slice %434 {offsets = [0, 32], sizes = [8, 32], strides = [1, 1]} : vector<8x96xf32> to vector<8x32xf32>
    %439 = vector.extract_strided_slice %434 {offsets = [0, 64], sizes = [8, 32], strides = [1, 1]} : vector<8x96xf32> to vector<8x32xf32>
    %440 = arith.mulf %438, %424 : vector<8x32xf32>
    %441 = arith.mulf %437, %436 : vector<8x32xf32>
    %442 = arith.addf %440, %441 : vector<8x32xf32>
    %443 = arith.select %4, %442, %424 : vector<8x32xi1>, vector<8x32xf32>
    %444 = math.tanh %443 : vector<8x32xf32>
    %445 = arith.mulf %439, %444 : vector<8x32xf32>
    %446 = arith.select %4, %445, %423 : vector<8x32xi1>, vector<8x32xf32>
    %447 = vector.extract_strided_slice %422 {offsets = [8, 0], sizes = [8, 128], strides = [1, 1]} : vector<64x128xf32> to vector<8x128xf32>
    %448 = arith.truncf %446 : vector<8x32xf32> to vector<8x32xbf16>
    %cst_71 = arith.constant dense<0.000000e+00> : vector<8x128xf32>
    %449 = tpu.matmul %448, %416, %cst_71 {dimension_numbers = #tpu.dot_dimension_numbers<[1], [0], [0], [1], [0, 0, 1, 1], [], []>} : vector<8x32xbf16>, vector<32x128xbf16>, vector<8x128xf32> -> vector<8x128xf32>
    %450 = arith.addf %447, %449 : vector<8x128xf32>
    %451 = vector.extract_strided_slice %450 {offsets = [0, 0], sizes = [8, 96], strides = [1, 1]} : vector<8x128xf32> to vector<8x96xf32>
    %452 = arith.negf %451 : vector<8x96xf32>
    %453 = math.exp %452 : vector<8x96xf32>
    %cst_72 = arith.constant 1.000000e+00 : f32
    %454 = vector.broadcast %cst_72 : f32 to vector<8x96xf32>
    %455 = arith.addf %454, %453 : vector<8x96xf32>
    %456 = arith.divf %454, %455 : vector<8x96xf32>
    %457 = vector.extract_strided_slice %450 {offsets = [0, 96], sizes = [8, 32], strides = [1, 1]} : vector<8x128xf32> to vector<8x32xf32>
    %458 = math.tanh %457 : vector<8x32xf32>
    %459 = vector.extract_strided_slice %456 {offsets = [0, 0], sizes = [8, 32], strides = [1, 1]} : vector<8x96xf32> to vector<8x32xf32>
    %460 = vector.extract_strided_slice %456 {offsets = [0, 32], sizes = [8, 32], strides = [1, 1]} : vector<8x96xf32> to vector<8x32xf32>
    %461 = vector.extract_strided_slice %456 {offsets = [0, 64], sizes = [8, 32], strides = [1, 1]} : vector<8x96xf32> to vector<8x32xf32>
    %462 = arith.mulf %460, %443 : vector<8x32xf32>
    %463 = arith.mulf %459, %458 : vector<8x32xf32>
    %464 = arith.addf %462, %463 : vector<8x32xf32>
    %465 = arith.select %8, %464, %443 : vector<8x32xi1>, vector<8x32xf32>
    %466 = math.tanh %465 : vector<8x32xf32>
    %467 = arith.mulf %461, %466 : vector<8x32xf32>
    %468 = arith.select %8, %467, %446 : vector<8x32xi1>, vector<8x32xf32>
    %469 = vector.extract_strided_slice %422 {offsets = [16, 0], sizes = [8, 128], strides = [1, 1]} : vector<64x128xf32> to vector<8x128xf32>
    %470 = arith.truncf %468 : vector<8x32xf32> to vector<8x32xbf16>
    %cst_73 = arith.constant dense<0.000000e+00> : vector<8x128xf32>
    %471 = tpu.matmul %470, %416, %cst_73 {dimension_numbers = #tpu.dot_dimension_numbers<[1], [0], [0], [1], [0, 0, 1, 1], [], []>} : vector<8x32xbf16>, vector<32x128xbf16>, vector<8x128xf32> -> vector<8x128xf32>
    %472 = arith.addf %469, %471 : vector<8x128xf32>
    %473 = vector.extract_strided_slice %472 {offsets = [0, 0], sizes = [8, 96], strides = [1, 1]} : vector<8x128xf32> to vector<8x96xf32>
    %474 = arith.negf %473 : vector<8x96xf32>
    %475 = math.exp %474 : vector<8x96xf32>
    %cst_74 = arith.constant 1.000000e+00 : f32
    %476 = vector.broadcast %cst_74 : f32 to vector<8x96xf32>
    %477 = arith.addf %476, %475 : vector<8x96xf32>
    %478 = arith.divf %476, %477 : vector<8x96xf32>
    %479 = vector.extract_strided_slice %472 {offsets = [0, 96], sizes = [8, 32], strides = [1, 1]} : vector<8x128xf32> to vector<8x32xf32>
    %480 = math.tanh %479 : vector<8x32xf32>
    %481 = vector.extract_strided_slice %478 {offsets = [0, 0], sizes = [8, 32], strides = [1, 1]} : vector<8x96xf32> to vector<8x32xf32>
    %482 = vector.extract_strided_slice %478 {offsets = [0, 32], sizes = [8, 32], strides = [1, 1]} : vector<8x96xf32> to vector<8x32xf32>
    %483 = vector.extract_strided_slice %478 {offsets = [0, 64], sizes = [8, 32], strides = [1, 1]} : vector<8x96xf32> to vector<8x32xf32>
    %484 = arith.mulf %482, %465 : vector<8x32xf32>
    %485 = arith.mulf %481, %480 : vector<8x32xf32>
    %486 = arith.addf %484, %485 : vector<8x32xf32>
    %487 = arith.select %12, %486, %465 : vector<8x32xi1>, vector<8x32xf32>
    %488 = math.tanh %487 : vector<8x32xf32>
    %489 = arith.mulf %483, %488 : vector<8x32xf32>
    %490 = arith.select %12, %489, %468 : vector<8x32xi1>, vector<8x32xf32>
    %491 = vector.extract_strided_slice %422 {offsets = [24, 0], sizes = [8, 128], strides = [1, 1]} : vector<64x128xf32> to vector<8x128xf32>
    %492 = arith.truncf %490 : vector<8x32xf32> to vector<8x32xbf16>
    %cst_75 = arith.constant dense<0.000000e+00> : vector<8x128xf32>
    %493 = tpu.matmul %492, %416, %cst_75 {dimension_numbers = #tpu.dot_dimension_numbers<[1], [0], [0], [1], [0, 0, 1, 1], [], []>} : vector<8x32xbf16>, vector<32x128xbf16>, vector<8x128xf32> -> vector<8x128xf32>
    %494 = arith.addf %491, %493 : vector<8x128xf32>
    %495 = vector.extract_strided_slice %494 {offsets = [0, 0], sizes = [8, 96], strides = [1, 1]} : vector<8x128xf32> to vector<8x96xf32>
    %496 = arith.negf %495 : vector<8x96xf32>
    %497 = math.exp %496 : vector<8x96xf32>
    %cst_76 = arith.constant 1.000000e+00 : f32
    %498 = vector.broadcast %cst_76 : f32 to vector<8x96xf32>
    %499 = arith.addf %498, %497 : vector<8x96xf32>
    %500 = arith.divf %498, %499 : vector<8x96xf32>
    %501 = vector.extract_strided_slice %494 {offsets = [0, 96], sizes = [8, 32], strides = [1, 1]} : vector<8x128xf32> to vector<8x32xf32>
    %502 = math.tanh %501 : vector<8x32xf32>
    %503 = vector.extract_strided_slice %500 {offsets = [0, 0], sizes = [8, 32], strides = [1, 1]} : vector<8x96xf32> to vector<8x32xf32>
    %504 = vector.extract_strided_slice %500 {offsets = [0, 32], sizes = [8, 32], strides = [1, 1]} : vector<8x96xf32> to vector<8x32xf32>
    %505 = vector.extract_strided_slice %500 {offsets = [0, 64], sizes = [8, 32], strides = [1, 1]} : vector<8x96xf32> to vector<8x32xf32>
    %506 = arith.mulf %504, %487 : vector<8x32xf32>
    %507 = arith.mulf %503, %502 : vector<8x32xf32>
    %508 = arith.addf %506, %507 : vector<8x32xf32>
    %509 = arith.select %16, %508, %487 : vector<8x32xi1>, vector<8x32xf32>
    %510 = math.tanh %509 : vector<8x32xf32>
    %511 = arith.mulf %505, %510 : vector<8x32xf32>
    %512 = arith.select %16, %511, %490 : vector<8x32xi1>, vector<8x32xf32>
    %513 = vector.extract_strided_slice %422 {offsets = [32, 0], sizes = [8, 128], strides = [1, 1]} : vector<64x128xf32> to vector<8x128xf32>
    %514 = arith.truncf %512 : vector<8x32xf32> to vector<8x32xbf16>
    %cst_77 = arith.constant dense<0.000000e+00> : vector<8x128xf32>
    %515 = tpu.matmul %514, %416, %cst_77 {dimension_numbers = #tpu.dot_dimension_numbers<[1], [0], [0], [1], [0, 0, 1, 1], [], []>} : vector<8x32xbf16>, vector<32x128xbf16>, vector<8x128xf32> -> vector<8x128xf32>
    %516 = arith.addf %513, %515 : vector<8x128xf32>
    %517 = vector.extract_strided_slice %516 {offsets = [0, 0], sizes = [8, 96], strides = [1, 1]} : vector<8x128xf32> to vector<8x96xf32>
    %518 = arith.negf %517 : vector<8x96xf32>
    %519 = math.exp %518 : vector<8x96xf32>
    %cst_78 = arith.constant 1.000000e+00 : f32
    %520 = vector.broadcast %cst_78 : f32 to vector<8x96xf32>
    %521 = arith.addf %520, %519 : vector<8x96xf32>
    %522 = arith.divf %520, %521 : vector<8x96xf32>
    %523 = vector.extract_strided_slice %516 {offsets = [0, 96], sizes = [8, 32], strides = [1, 1]} : vector<8x128xf32> to vector<8x32xf32>
    %524 = math.tanh %523 : vector<8x32xf32>
    %525 = vector.extract_strided_slice %522 {offsets = [0, 0], sizes = [8, 32], strides = [1, 1]} : vector<8x96xf32> to vector<8x32xf32>
    %526 = vector.extract_strided_slice %522 {offsets = [0, 32], sizes = [8, 32], strides = [1, 1]} : vector<8x96xf32> to vector<8x32xf32>
    %527 = vector.extract_strided_slice %522 {offsets = [0, 64], sizes = [8, 32], strides = [1, 1]} : vector<8x96xf32> to vector<8x32xf32>
    %528 = arith.mulf %526, %509 : vector<8x32xf32>
    %529 = arith.mulf %525, %524 : vector<8x32xf32>
    %530 = arith.addf %528, %529 : vector<8x32xf32>
    %531 = arith.select %20, %530, %509 : vector<8x32xi1>, vector<8x32xf32>
    %532 = math.tanh %531 : vector<8x32xf32>
    %533 = arith.mulf %527, %532 : vector<8x32xf32>
    %534 = arith.select %20, %533, %512 : vector<8x32xi1>, vector<8x32xf32>
    %535 = vector.extract_strided_slice %422 {offsets = [40, 0], sizes = [8, 128], strides = [1, 1]} : vector<64x128xf32> to vector<8x128xf32>
    %536 = arith.truncf %534 : vector<8x32xf32> to vector<8x32xbf16>
    %cst_79 = arith.constant dense<0.000000e+00> : vector<8x128xf32>
    %537 = tpu.matmul %536, %416, %cst_79 {dimension_numbers = #tpu.dot_dimension_numbers<[1], [0], [0], [1], [0, 0, 1, 1], [], []>} : vector<8x32xbf16>, vector<32x128xbf16>, vector<8x128xf32> -> vector<8x128xf32>
    %538 = arith.addf %535, %537 : vector<8x128xf32>
    %539 = vector.extract_strided_slice %538 {offsets = [0, 0], sizes = [8, 96], strides = [1, 1]} : vector<8x128xf32> to vector<8x96xf32>
    %540 = arith.negf %539 : vector<8x96xf32>
    %541 = math.exp %540 : vector<8x96xf32>
    %cst_80 = arith.constant 1.000000e+00 : f32
    %542 = vector.broadcast %cst_80 : f32 to vector<8x96xf32>
    %543 = arith.addf %542, %541 : vector<8x96xf32>
    %544 = arith.divf %542, %543 : vector<8x96xf32>
    %545 = vector.extract_strided_slice %538 {offsets = [0, 96], sizes = [8, 32], strides = [1, 1]} : vector<8x128xf32> to vector<8x32xf32>
    %546 = math.tanh %545 : vector<8x32xf32>
    %547 = vector.extract_strided_slice %544 {offsets = [0, 0], sizes = [8, 32], strides = [1, 1]} : vector<8x96xf32> to vector<8x32xf32>
    %548 = vector.extract_strided_slice %544 {offsets = [0, 32], sizes = [8, 32], strides = [1, 1]} : vector<8x96xf32> to vector<8x32xf32>
    %549 = vector.extract_strided_slice %544 {offsets = [0, 64], sizes = [8, 32], strides = [1, 1]} : vector<8x96xf32> to vector<8x32xf32>
    %550 = arith.mulf %548, %531 : vector<8x32xf32>
    %551 = arith.mulf %547, %546 : vector<8x32xf32>
    %552 = arith.addf %550, %551 : vector<8x32xf32>
    %553 = arith.select %24, %552, %531 : vector<8x32xi1>, vector<8x32xf32>
    %554 = math.tanh %553 : vector<8x32xf32>
    %555 = arith.mulf %549, %554 : vector<8x32xf32>
    %556 = arith.select %24, %555, %534 : vector<8x32xi1>, vector<8x32xf32>
    %557 = vector.extract_strided_slice %422 {offsets = [48, 0], sizes = [8, 128], strides = [1, 1]} : vector<64x128xf32> to vector<8x128xf32>
    %558 = arith.truncf %556 : vector<8x32xf32> to vector<8x32xbf16>
    %cst_81 = arith.constant dense<0.000000e+00> : vector<8x128xf32>
    %559 = tpu.matmul %558, %416, %cst_81 {dimension_numbers = #tpu.dot_dimension_numbers<[1], [0], [0], [1], [0, 0, 1, 1], [], []>} : vector<8x32xbf16>, vector<32x128xbf16>, vector<8x128xf32> -> vector<8x128xf32>
    %560 = arith.addf %557, %559 : vector<8x128xf32>
    %561 = vector.extract_strided_slice %560 {offsets = [0, 0], sizes = [8, 96], strides = [1, 1]} : vector<8x128xf32> to vector<8x96xf32>
    %562 = arith.negf %561 : vector<8x96xf32>
    %563 = math.exp %562 : vector<8x96xf32>
    %cst_82 = arith.constant 1.000000e+00 : f32
    %564 = vector.broadcast %cst_82 : f32 to vector<8x96xf32>
    %565 = arith.addf %564, %563 : vector<8x96xf32>
    %566 = arith.divf %564, %565 : vector<8x96xf32>
    %567 = vector.extract_strided_slice %560 {offsets = [0, 96], sizes = [8, 32], strides = [1, 1]} : vector<8x128xf32> to vector<8x32xf32>
    %568 = math.tanh %567 : vector<8x32xf32>
    %569 = vector.extract_strided_slice %566 {offsets = [0, 0], sizes = [8, 32], strides = [1, 1]} : vector<8x96xf32> to vector<8x32xf32>
    %570 = vector.extract_strided_slice %566 {offsets = [0, 32], sizes = [8, 32], strides = [1, 1]} : vector<8x96xf32> to vector<8x32xf32>
    %571 = vector.extract_strided_slice %566 {offsets = [0, 64], sizes = [8, 32], strides = [1, 1]} : vector<8x96xf32> to vector<8x32xf32>
    %572 = arith.mulf %570, %553 : vector<8x32xf32>
    %573 = arith.mulf %569, %568 : vector<8x32xf32>
    %574 = arith.addf %572, %573 : vector<8x32xf32>
    %575 = arith.select %28, %574, %553 : vector<8x32xi1>, vector<8x32xf32>
    %576 = math.tanh %575 : vector<8x32xf32>
    %577 = arith.mulf %571, %576 : vector<8x32xf32>
    %578 = arith.select %28, %577, %556 : vector<8x32xi1>, vector<8x32xf32>
    %579 = vector.extract_strided_slice %422 {offsets = [56, 0], sizes = [8, 128], strides = [1, 1]} : vector<64x128xf32> to vector<8x128xf32>
    %580 = arith.truncf %578 : vector<8x32xf32> to vector<8x32xbf16>
    %cst_83 = arith.constant dense<0.000000e+00> : vector<8x128xf32>
    %581 = tpu.matmul %580, %416, %cst_83 {dimension_numbers = #tpu.dot_dimension_numbers<[1], [0], [0], [1], [0, 0, 1, 1], [], []>} : vector<8x32xbf16>, vector<32x128xbf16>, vector<8x128xf32> -> vector<8x128xf32>
    %582 = arith.addf %579, %581 : vector<8x128xf32>
    %583 = vector.extract_strided_slice %582 {offsets = [0, 0], sizes = [8, 96], strides = [1, 1]} : vector<8x128xf32> to vector<8x96xf32>
    %584 = arith.negf %583 : vector<8x96xf32>
    %585 = math.exp %584 : vector<8x96xf32>
    %cst_84 = arith.constant 1.000000e+00 : f32
    %586 = vector.broadcast %cst_84 : f32 to vector<8x96xf32>
    %587 = arith.addf %586, %585 : vector<8x96xf32>
    %588 = arith.divf %586, %587 : vector<8x96xf32>
    %589 = vector.extract_strided_slice %582 {offsets = [0, 96], sizes = [8, 32], strides = [1, 1]} : vector<8x128xf32> to vector<8x32xf32>
    %590 = math.tanh %589 : vector<8x32xf32>
    %591 = vector.extract_strided_slice %588 {offsets = [0, 0], sizes = [8, 32], strides = [1, 1]} : vector<8x96xf32> to vector<8x32xf32>
    %592 = vector.extract_strided_slice %588 {offsets = [0, 32], sizes = [8, 32], strides = [1, 1]} : vector<8x96xf32> to vector<8x32xf32>
    %593 = arith.mulf %592, %575 : vector<8x32xf32>
    %594 = arith.mulf %591, %590 : vector<8x32xf32>
    %595 = arith.addf %593, %594 : vector<8x32xf32>
    %596 = arith.select %32, %595, %575 : vector<8x32xi1>, vector<8x32xf32>
    %c0_85 = arith.constant 0 : index
    %c0_86 = arith.constant 0 : index
    %597 = vector.load %arg3[%c0_85, %c0_86] : memref<8x32xf32, #tpu.memory_space<vmem>>, vector<8x32xf32>
    %598 = arith.mulf %597, %596 : vector<8x32xf32>
    %cst_87 = arith.constant dense<0.000000e+00> : vector<8xf32>
    %599 = vector.multi_reduction <add>, %598, %cst_87 [1] : vector<8x32xf32> to vector<8xf32>
    %600 = vector.shape_cast %599 : vector<8xf32> to vector<8x1xf32>
    %601 = arith.negf %600 : vector<8x1xf32>
    %602 = math.exp %601 : vector<8x1xf32>
    %cst_88 = arith.constant 1.000000e+00 : f32
    %603 = vector.broadcast %cst_88 : f32 to vector<8x1xf32>
    %604 = arith.addf %603, %602 : vector<8x1xf32>
    %605 = arith.divf %603, %604 : vector<8x1xf32>
    %c0_89 = arith.constant 0 : index
    %c0_90 = arith.constant 0 : index
    %606 = vector.load %arg7[%c0_89, %c0_90] : memref<8x1xf32, #tpu.memory_space<vmem>>, vector<8x1xf32>
    tpu.vector_store %arg7[%c0_89, %c0_90], %605 {strides = array<i32>} : memref<8x1xf32, #tpu.memory_space<vmem>>, vector<8x1xf32>,
    return
  }
  func.func @transform_0(%arg0: i32) -> (i32, i32, i32) {
    %c0_i32 = arith.constant 0 : i32
    %c0_i32_0 = arith.constant 0 : i32
    %c0_i32_1 = arith.constant 0 : i32
    %c0_i32_2 = arith.constant 0 : i32
    return %c0_i32, %c0_i32_0, %c0_i32_1 : i32, i32, i32
  }
  func.func @transform_1(%arg0: i32) -> (i32, i32) {
    %c0_i32 = arith.constant 0 : i32
    %c0_i32_0 = arith.constant 0 : i32
    %c0_i32_1 = arith.constant 0 : i32
    return %c0_i32, %c0_i32_0 : i32, i32
  }
  func.func @transform_2(%arg0: i32) -> (i32, i32) {
    %c0_i32 = arith.constant 0 : i32
    %c0_i32_0 = arith.constant 0 : i32
    %c0_i32_1 = arith.constant 0 : i32
    return %c0_i32, %c0_i32_0 : i32, i32
  }
  func.func @transform_3(%arg0: i32) -> (i32, i32, i32) {
    %c0_i32 = arith.constant 0 : i32
    %c0_i32_0 = arith.constant 0 : i32
    %c0_i32_1 = arith.constant 0 : i32
    %c0_i32_2 = arith.constant 0 : i32
    return %c0_i32, %c0_i32_0, %c0_i32_1 : i32, i32, i32
  }
  func.func @transform_4(%arg0: i32) -> (i32, i32, i32) {
    %c0_i32 = arith.constant 0 : i32
    %c0_i32_0 = arith.constant 0 : i32
    %c0_i32_1 = arith.constant 0 : i32
    %c0_i32_2 = arith.constant 0 : i32
    return %c0_i32, %c0_i32_0, %c0_i32_1 : i32, i32, i32
  }
  func.func @transform_5(%arg0: i32) -> (i32, i32, i32) {
    %c0_i32 = arith.constant 0 : i32
    %c0_i32_0 = arith.constant 0 : i32
    %c0_i32_1 = arith.constant 0 : i32
    %c0_i32_2 = arith.constant 0 : i32
    return %c0_i32, %c0_i32_0, %c0_i32_1 : i32, i32, i32
  }
  func.func @transform_6(%arg0: i32) -> (i32, i32) {
    %c0_i32 = arith.constant 0 : i32
    %c0_i32_0 = arith.constant 0 : i32
    %c0_i32_1 = arith.constant 0 : i32
    return %c0_i32, %c0_i32_0 : i32, i32
  }
}

</mosaic_0001>

<bundles_post_ra>
// kernel: tpu_custom_call.1
= control target key start
LH: loop header
LB: loop body
LE: loop exit
PB: predicated region body
PF: predicated region fallthrough
CT: control target
= control target key end

     0   :  { %11 = vsyncpa [#allocation3], 0  ;;  %s3691_s0 = inlined_call_operand.hbm [shape: f32[8,8,32], index: 0, kind: input, shape index: {}]   ;;  %s3692_s1 = inlined_call_operand.vmem [shape: s32[8,1], index: 1, kind: input, shape index: {}]   ;;  %s3693_s2 = inlined_call_operand.vmem [shape: f32[8,32], index: 2, kind: input, shape index: {}]   ;;  %s3694_s3 = inlined_call_operand.hbm [shape: bf16[3,32,128], index: 3, kind: input, shape index: {}]   ;;  %s3695_s4 = inlined_call_operand.hbm [shape: bf16[3,32,128], index: 4, kind: input, shape index: {}]   ;;  %s3696_s5 = inlined_call_operand.vmem [shape: f32[3,1,128], index: 5, kind: input, shape index: {}]   ;;  %s3697_s6 = inlined_call_operand.vmem [shape: f32[8,1], index: 6, kind: output, shape index: {}]  }
   0x1   :  { %12 = vsyncpa [#allocation5], 0  ;;  %s2970_s21 = smov [#allocation4]   ;;  %s2900_s25 = scalar_lea.hbm %s3694_s3, 768 }
   0x2   :  { %s34_s22 = sshll.u32 %s2970_s21, 4  ;;  %p2901_p0 = scmp.ne.s32.totalorder %s3694_s3, %s2900_s25  ;;  %s35_s22 = int_to_ptr.vmem [resolvable:$true] %s34_s22 }
   0x3   :  { %p2904_p1 = scmp.lt.u32.totalorder %s2900_s25, %s3694_s3 }
   0x5   :  { %p2906_p2 = pnand %p2904_p1, %p2901_p0 }
   0x7   :  { %2909 = shalt.err (!%p2906_p2)
}
   0x8   :  { %s2910_s30 = scalar_lea.vmem %s35_s22, 768  ;;  %p2915_p4 = scmp.lt.s32.totalorder %s35_s22, %s35_s22 }
   0x9   :  { %p2911_p3 = scmp.ne.s32.totalorder %s35_s22, %s2910_s30  ;;  %p2916_p5 = scmp.lt.s32.totalorder %s2910_s30, %s2910_s30 }
   0xb   :  { %p2917_p6 = por %p2916_p5, %p2915_p4 }
   0xd   :  { %p2918_p7 = pnand %p2917_p6, %p2911_p3 }
   0xf   :  { %2921 = shalt.err (!%p2918_p7)
}
  0x10   :  { %s2971_s7 = smov 64   ;;  %s2972_s8 = smov 4  }
  0x11   :  { %40 = dma.hbm_to_vmem [thread:$0]  %s3694_s3, 768, %s35_s22, [#allocation5], %s2971_s7, %s2971_s7, %s2972_s8  }
  0x12   :  { %s2973_s11 = smov [#allocation2]   ;;  %s2922_s15 = scalar_lea.hbm %s3691_s0, 1024 }
  0x13   :  { %s18_s12 = sshll.u32 %s2973_s11, 4  ;;  %p2923_p8 = scmp.ne.s32.totalorder %s3691_s0, %s2922_s15  ;;  %s19_s12 = int_to_ptr.vmem [resolvable:$true] %s18_s12 }
  0x14   :  { %p2926_p9 = scmp.lt.u32.totalorder %s2922_s15, %s3691_s0 }
  0x16   :  { %p2928_p10 = pnand %p2926_p9, %p2923_p8 }
  0x18   :  { %2931 = shalt.err (!%p2928_p10)
}
  0x19   :  { %s2932_s20 = scalar_lea.vmem %s19_s12, 1024  ;;  %p2937_p12 = scmp.lt.s32.totalorder %s19_s12, %s19_s12 }
  0x1a   :  { %p2933_p11 = scmp.ne.s32.totalorder %s19_s12, %s2932_s20  ;;  %p2938_p13 = scmp.lt.s32.totalorder %s2932_s20, %s2932_s20 }
  0x1c   :  { %p2939_p0 = por %p2938_p13, %p2937_p12 }
  0x1e   :  { %p2940_p1 = pnand %p2939_p0, %p2933_p11 }
  0x20   :  { %2943 = shalt.err (!%p2940_p1)
}
  0x21   :  { %s2974_s3 = smov 128   ;;  %s2975_s21 = smov 8  }
  0x22   :  { %24 = dma.hbm_to_vmem [thread:$0]  %s3691_s0, 1024, %s19_s12, [#allocation3], %s2974_s3, %s2974_s3, %s2975_s21  }
  0x23   :  { %s2976_s24 = smov [#allocation6]   ;;  %s2944_s28 = scalar_lea.hbm %s3695_s4, 768 }
  0x24   :  { %s46_s25 = sshll.u32 %s2976_s24, 4  ;;  %p2945_p2 = scmp.ne.s32.totalorder %s3695_s4, %s2944_s28  ;;  %s47_s25 = int_to_ptr.vmem [resolvable:$true] %s46_s25 }
  0x25   :  { %p2948_p3 = scmp.lt.u32.totalorder %s2944_s28, %s3695_s4 }
  0x27   :  { %p2950_p4 = pnand %p2948_p3, %p2945_p2 }
  0x29   :  { %2953 = shalt.err (!%p2950_p4)
}
  0x2a   :  { %s2954_s11 = scalar_lea.vmem %s47_s25, 768  ;;  %p2959_p6 = scmp.lt.s32.totalorder %s47_s25, %s47_s25 }
  0x2b   :  { %p2955_p5 = scmp.ne.s32.totalorder %s47_s25, %s2954_s11  ;;  %p2960_p7 = scmp.lt.s32.totalorder %s2954_s11, %s2954_s11 }
  0x2d   :  { %p2961_p8 = por %p2960_p7, %p2959_p6 }
  0x2f   :  { %p2962_p9 = pnand %p2961_p8, %p2955_p5 }
  0x31   :  { %2965 = shalt.err (!%p2962_p9)
}
  0x32   :  { %52 = dma.hbm_to_vmem [thread:$0]  %s3695_s4, 768, %s47_s25, [#allocation5], %s2971_s7, %s2971_s7, %s2972_s8  }
  0x33   :  { %2966 = dma.done.wait [#allocation3], 1024  }
  0x34   :  { %2967 = vsyncadd [#allocation3], 4294966272 }
  0x35   :  { %2968 = dma.done.wait [#allocation5], 1536  }
  0x36   :  { %2969 = vsyncadd [#allocation5], 4294965760  ;;  %v2977_v0 = vmov 0.0   ;;  %vm2978_vm0 = vmmov 0   ;;  %v2979_v1 = vmov 0   ;;  %v2694_v2 = vld [vmem:[#allocation4] sm:$0xff]  }
  0x37   :  { %2464 = vmatprep.subr.bf16.mxu1 %v2977_v0  ;;  %2468 = vmatprep.mubr.msk.bf16.mxu1 %vm2978_vm0, %v2977_v0  ;;  %v3064_v3 = vld [vmem:[#allocation6] sm:$0xff]   ;;  %v2696_v4 = vld [vmem:[#allocation4 + $0x8] sm:$0xff]   ;;  %v3067_v5 = vld [vmem:[#allocation6 + $0x8] sm:$0xff]   ;;  %vm153_vm1 = vcmask 261120   ;;  %s2980_s15 = smov 32  }
  0x38   :  { %2692 = vset.pattern.permute.xlu0 %v2979_v1  ;;  %2693 = vset.pattern.permute.xlu1 %v2979_v1  ;;  %v114_v6 = vld [vmem:[#allocation2] sm:$0xff]  ;;  %v115_v7 = vld [vmem:[#allocation2 + $0x8] sm:$0xff]  ;;  %v116_v8 = vld [vmem:[#allocation2 + $0x10] sm:$0xff] }
  0x39   :  { %2452 = vmatprep.subr.bf16.mxu0 %v2694_v2  ;;  %2465 = vmatpush3.bf16.msra.mxu1 %v3064_v3  ;;  %v131_v9 = vpack.c.bf16 %v115_v7, %v114_v6  ;;  %v117_v10 = vld [vmem:[#allocation2 + $0x18] sm:$0xff]  ;;  %v3089_v12 = vld [vmem:[%s3696_s5] ss:$0 sm:$0xff]  ;;  %v119_v63 = vld [vmem:[#allocation2 + $0x28] sm:$0xff] }
  0x3a   :  { %2453 = vmatpush3.bf16.msra.mxu0 %v2694_v2  ;;  %2466 = vmatprep.subr.bf16.mxu1 %v2977_v0  ;;  %v132_v11 = vpack.c.bf16 %v117_v10, %v116_v8  ;;  %v3099_v23 = vld [vmem:[%s3692_s1] sm:$0xff]  ;;  %v120_v2 = vld [vmem:[#allocation2 + $0x30] sm:$0xff]  ;;  %v121_v6 = vld [vmem:[#allocation2 + $0x38] sm:$0xff] }
  0x3b   :  { %2454 = vmatprep.subr.bf16.mxu0 %v2696_v4  ;;  %2456 = vmatprep.mubr.msk.bf16.mxu0 %vm153_vm1, %v131_v9  ;;  %vm66_vm2 = vcmp.gt.s32.totalorder %v3099_v23, 0  ;;  %vm72_vm4 = vcmp.gt.s32.totalorder %v3099_v23, 1  ;;  %v118_v62 = vld [vmem:[#allocation2 + $0x20] sm:$0xff]  ;;  %v134_v7 = vpack.c.bf16 %v121_v6, %v120_v2  ;;  %vm78_vm6 = vcmp.gt.s32.totalorder %v3099_v23, 2 }
  0x3c   :  { %v67_v25 = vsel %vm66_vm2, 1, %v2979_v1  ;;  %v73_v43 = vsel %vm72_vm4, 1, %v2979_v1  ;;  %vm84_vm8 = vcmp.gt.s32.totalorder %v3099_v23, 3  ;;  %vm90_vm10 = vcmp.gt.s32.totalorder %v3099_v23, 4 }
  0x3d   :  { %2467 = vmatpush3.bf16.msra.mxu1 %v3067_v5  ;;  %vm96_vm12 = vcmp.gt.s32.totalorder %v3099_v23, 5  ;;  %vm102_vm14 = vcmp.gt.s32.totalorder %v3099_v23, 6  ;;  %vm108_vm2 = vcmp.gt.s32.totalorder %v3099_v23, 7 }
  0x3e   :  { %2455 = vmatpush3.bf16.msra.mxu0 %v2696_v4  ;;  %2472 = vmatprep.subr.bf16.mxu1 %v2977_v0  ;;  %v133_v4 = vpack.c.bf16 %v119_v63, %v118_v62 }
  0x3f   :  { %2480 = vmatprep.subr.bf16.mxu0 %v2977_v0 }
  0x40   :  { %2469 = vmatmul.mubr.bf16.vlgmr.msra.gmra.mrb[0].mxu1 %v2979_v1 }
  0x41   :  { %2457 = vmatmul.mubr.msk.bf16.vlgmr.msra.gmra.mrb[0].mxu0 %vm153_vm1, %v132_v11  ;;  %2473 = vmatpush3.bf16.msra.mxu1 %v3064_v3 }
  0x42   :  { %2476 = vmatprep.mubr.msk.bf16.mxu1 %vm2978_vm0, %v2977_v0  ;;  %2474 = vmatprep.subr.bf16.mxu1 %v2977_v0 }
  0x43   :  { %2481 = vmatpush3.bf16.msra.mxu0 %v3064_v3  ;;  %2460 = vmatprep.mubr.msk.bf16.mxu0 %vm153_vm1, %v133_v4 }
  0x44   :  { %2482 = vmatprep.subr.bf16.mxu0 %v2977_v0 }
  0x45   :  { %2475 = vmatpush3.bf16.msra.mxu1 %v3067_v5 }
  0x46   :  { %2488 = vmatprep.subr.bf16.mxu1 %v2977_v0 }
  0x47   :  { %2483 = vmatpush3.bf16.msra.mxu0 %v3067_v5 }
  0x48   :  { %2496 = vmatprep.subr.bf16.mxu0 %v2977_v0 }
  0x49   :  { %2461 = vmatmul.mubr.msk.bf16.gmra.mrb[4].mxu0 %vm153_vm1, %v134_v7 }
  0x4a   :  { %2484 = vmatprep.mubr.msk.bf16.mxu0 %vm2978_vm0, %v2977_v0 }
 0x113   :  { %v280_v14 = vpop.f32.mrb[0].mxu1 }
 0x114   :  { %v3091_v13 = vpop.f32.mrb[0].mxu0  ;;  %v2470_v16 = vpop.f32.mrb[1].mxu1 }
 0x115   :  { %v200_v15 = vpop.f32.mrb[1].mxu0  ;;  %v283_v19 = vpop.f32.mrb[2].mxu1 }
 0x116   :  { %v201_v17 = vadd.f32 %v3089_v12, %v200_v15  ;;  %v3094_v18 = vpop.f32.mrb[2].mxu0  ;;  %v2471_v21 = vpop.f32.mrb[3].mxu1  ;;  %v79_v15 = vsel %vm78_vm6, 1, %v2979_v1 }
 0x117   :  { %v203_v20 = vpop.f32.mrb[3].mxu0 }
 0x118   :  { %v286_v22 = vadd.f32 %v280_v14, %v201_v17  ;;  %v204_v44 = vadd.f32 %v3089_v12, %v203_v20 }
 0x11a   :  { %2706 = vtanh.f32 %v286_v22  ;;  %v2296_v26 = vmul.f32 -1.442695, %v286_v22  ;;  %v209_v22 = vadd.f32 %v3091_v13, %v3089_v12 }
 0x11c   :  { %2708 = vpow2.f32 %v2296_v26  ;;  %v3150_v16 = vpop.f32.mrb[4].mxu0 }
 0x11d   :  { %v3152_v17 = vpop.f32.mrb[5].mxu0 }
 0x11e   :  { %v3154_v19 = vpop.f32.mrb[6].mxu0 }
 0x11f   :  { %v3156_v20 = vpop.f32.mrb[7].mxu0 }
 0x124   :  { %v2707_v24 = vpop.eup %2706 }
 0x125   :  { %296 = vrot.lane.b32.xlu0 %v2707_v24, %s2980_s15 }
 0x126   :  { %v2709_v27 = vpop.eup %2708 }
 0x127   :  { %v290_v28 = vadd.f32 1.0, %v2709_v27 }
 0x129   :  { %69 = vperm.xlu0 %2692, %v67_v25   ;;  %2710 = vrcp.f32 %v290_v28 }
 0x133   :  { %v2711_v29 = vpop.eup %2710 }
 0x134   :  { %v294_v33 = vmul.f32 0.0, %v2711_v29 }
 0x197   :  { %v297_v30 = vpop.permute.xlu0 %296 }
 0x198   :  { %v299_v31 = vmul.f32 %v2711_v29, %v297_v30 }
 0x19a   :  { %301 = vrot.lane.b32.xlu1 %v299_v31, %s2980_s15 }
 0x1a8   :  { %v3105_v32 = vpop.permute.xlu0 %69 }
 0x1a9   :  { %vm71_vm3 = vcmp.eq.s32.totalorder %v3105_v32, 1 }
 0x20c   :  { %v302_v34 = vpop.permute.xlu1 %301 }
 0x20d   :  { %v304_v35 = vadd.f32 %v302_v34, %v294_v33 }
 0x20f   :  { %v305_v36 = vsel %vm71_vm3, %v304_v35, 0.0 }
 0x210   :  { %2712 = vtanh.f32 %v305_v36 }
 0x21a   :  { %v2713_v37 = vpop.eup %2712 }
 0x21b   :  { %308 = vrot.lane.b32.xlu1 %v2713_v37, %s2980_s15 }
 0x28d   :  { %v309_v38 = vpop.permute.xlu1 %308 }
 0x28e   :  { %v311_v39 = vmul.f32 %v2711_v29, %v309_v38 }
 0x290   :  { %v3113_v40 = vsel %vm71_vm3, %v311_v39, 0.0 }
 0x291   :  { %v313_v41 = vpack.c.bf16 %v3113_v40, %v3113_v40 }
 0x293   :  { %315 = vrot.lane.b32.xlu1 %v313_v41, %s2971_s7 }
 0x297   :  { %75 = vperm.xlu1 %2693, %v73_v43  }
 0x305   :  { %v316_v42 = vpop.permute.xlu1 %315 }
 0x306   :  { %2477 = vmatmul.mubr.msk.bf16.vlgmr.msra.gmra.mrb[4].mxu1 %vm153_vm1, %v316_v42 }
 0x307   :  { %2489 = vmatpush3.bf16.msra.mxu1 %v3064_v3  ;;  %2492 = vmatprep.mubr.msk.bf16.mxu1 %vm2978_vm0, %v2977_v0 }
 0x308   :  { %2490 = vmatprep.subr.bf16.mxu1 %v2977_v0 }
 0x30b   :  { %2491 = vmatpush3.bf16.msra.mxu1 %v3067_v5 }
 0x30c   :  { %2504 = vmatprep.subr.bf16.mxu1 %v2977_v0 }
 0x316   :  { %v3130_v57 = vpop.permute.xlu1 %75 }
 0x317   :  { %vm77_vm5 = vcmp.eq.s32.totalorder %v3130_v57, 1 }
 0x3d9   :  { %v354_v45 = vpop.f32.mrb[4].mxu1 }
 0x3da   :  { %v360_v46 = vadd.f32 %v354_v45, %v204_v44  ;;  %v2478_v47 = vpop.f32.mrb[5].mxu1 }
 0x3db   :  { %v357_v48 = vpop.f32.mrb[6].mxu1  ;;  %v85_v47 = vsel %vm84_vm8, 1, %v2979_v1 }
 0x3dc   :  { %2714 = vtanh.f32 %v360_v46  ;;  %v2479_v49 = vpop.f32.mrb[7].mxu1  ;;  %v2298_v51 = vmul.f32 -1.442695, %v360_v46 }
 0x3dd   :  { %v212_v49 = vadd.f32 %v3094_v18, %v3089_v12 }
 0x3de   :  { %2716 = vpow2.f32 %v2298_v51 }
 0x3e6   :  { %v2715_v50 = vpop.eup %2714 }
 0x3e7   :  { %370 = vrot.lane.b32.xlu0 %v2715_v50, %s2980_s15 }
 0x3e8   :  { %v2717_v52 = vpop.eup %2716 }
 0x3e9   :  { %v364_v53 = vadd.f32 1.0, %v2717_v52 }
 0x3eb   :  { %2718 = vrcp.f32 %v364_v53 }
 0x3f5   :  { %v2719_v54 = vpop.eup %2718 }
 0x3f6   :  { %v368_v58 = vmul.f32 %v2719_v54, %v305_v36 }
 0x459   :  { %v371_v55 = vpop.permute.xlu0 %370 }
 0x45a   :  { %v373_v56 = vmul.f32 %v2719_v54, %v371_v55 }
 0x45c   :  { %375 = vrot.lane.b32.xlu0 %v373_v56, %s2980_s15 }
 0x4ce   :  { %v376_v59 = vpop.permute.xlu0 %375 }
 0x4cf   :  { %v378_v60 = vadd.f32 %v376_v59, %v368_v58 }
 0x4d1   :  { %v379_v61 = vsel %vm77_vm5, %v378_v60, %v305_v36 }
 0x4d2   :  { %2720 = vtanh.f32 %v379_v61 }
 0x4dc   :  { %v2721_v8 = vpop.eup %2720 }
 0x4dd   :  { %382 = vrot.lane.b32.xlu1 %v2721_v8, %s2980_s15 }
 0x54f   :  { %v383_v9 = vpop.permute.xlu1 %382 }
 0x550   :  { %v385_v10 = vmul.f32 %v2719_v54, %v383_v9 }
 0x552   :  { %v3143_v11 = vsel %vm77_vm5, %v385_v10, %v3113_v40 }
 0x553   :  { %v387_v14 = vpack.c.bf16 %v3143_v11, %v3143_v11 }
 0x555   :  { %389 = vrot.lane.b32.xlu0 %v387_v14, %s2971_s7 }
 0x559   :  { %81 = vperm.xlu0 %2692, %v79_v15   ;;  %v91_v15 = vsel %vm90_vm10, 1, %v2979_v1 }
 0x5c7   :  { %v390_v21 = vpop.permute.xlu0 %389 }
 0x5c8   :  { %2485 = vmatmul.mubr.msk.bf16.vlgmr.msra.gmra.mrb[8].mxu0 %vm153_vm1, %v390_v21 }
 0x5c9   :  { %2497 = vmatpush3.bf16.msra.mxu0 %v3064_v3  ;;  %2500 = vmatprep.mubr.msk.bf16.mxu0 %vm2978_vm0, %v2977_v0 }
 0x5ca   :  { %2498 = vmatprep.subr.bf16.mxu0 %v2977_v0 }
 0x5cd   :  { %2499 = vmatpush3.bf16.msra.mxu0 %v3067_v5 }
 0x5ce   :  { %2512 = vmatprep.subr.bf16.mxu0 %v2977_v0 }
 0x5d8   :  { %v3169_v13 = vpop.permute.xlu0 %81 }
 0x5d9   :  { %vm83_vm7 = vcmp.eq.s32.totalorder %v3169_v13, 1 }
 0x69b   :  { %v428_v24 = vpop.f32.mrb[8].mxu0 }
 0x69c   :  { %v434_v25 = vadd.f32 %v428_v24, %v209_v22  ;;  %v2486_v26 = vpop.f32.mrb[9].mxu0  ;;  %v217_v22 = vadd.f32 %v3089_v12, %v3152_v17 }
 0x69d   :  { %v431_v27 = vpop.f32.mrb[10].mxu0 }
 0x69e   :  { %2722 = vtanh.f32 %v434_v25  ;;  %v2487_v28 = vpop.f32.mrb[11].mxu0  ;;  %v2300_v30 = vmul.f32 -1.442695, %v434_v25 }
 0x6a0   :  { %2724 = vpow2.f32 %v2300_v30 }
 0x6a8   :  { %v2723_v29 = vpop.eup %2722 }
 0x6a9   :  { %444 = vrot.lane.b32.xlu1 %v2723_v29, %s2980_s15 }
 0x6aa   :  { %v2725_v31 = vpop.eup %2724 }
 0x6ab   :  { %v438_v33 = vadd.f32 1.0, %v2725_v31 }
 0x6ad   :  { %2726 = vrcp.f32 %v438_v33 }
 0x6b7   :  { %v2727_v34 = vpop.eup %2726 }
 0x6b8   :  { %v442_v37 = vmul.f32 %v2727_v34, %v379_v61 }
 0x71b   :  { %v445_v35 = vpop.permute.xlu1 %444 }
 0x71c   :  { %v447_v36 = vmul.f32 %v2727_v34, %v445_v35 }
 0x71e   :  { %449 = vrot.lane.b32.xlu1 %v447_v36, %s2980_s15 }
 0x790   :  { %v450_v38 = vpop.permute.xlu1 %449 }
 0x791   :  { %v452_v39 = vadd.f32 %v450_v38, %v442_v37 }
 0x793   :  { %v453_v41 = vsel %vm83_vm7, %v452_v39, %v379_v61 }
 0x794   :  { %2728 = vtanh.f32 %v453_v41 }
 0x79e   :  { %v2729_v42 = vpop.eup %2728 }
 0x79f   :  { %456 = vrot.lane.b32.xlu0 %v2729_v42, %s2980_s15 }
 0x811   :  { %v457_v43 = vpop.permute.xlu0 %456 }
 0x812   :  { %v459_v44 = vmul.f32 %v2727_v34, %v457_v43 }
 0x814   :  { %v3178_v45 = vsel %vm83_vm7, %v459_v44, %v3143_v11 }
 0x815   :  { %v461_v46 = vpack.c.bf16 %v3178_v45, %v3178_v45 }
 0x817   :  { %463 = vrot.lane.b32.xlu1 %v461_v46, %s2971_s7 }
 0x81b   :  { %87 = vperm.xlu1 %2693, %v85_v47  }
 0x889   :  { %v464_v48 = vpop.permute.xlu1 %463 }
 0x88a   :  { %2493 = vmatmul.mubr.msk.bf16.vlgmr.msra.gmra.mrb[8].mxu1 %vm153_vm1, %v464_v48  ;;  %v97_v48 = vsel %vm96_vm12, 1, %v2979_v1 }
 0x88b   :  { %2505 = vmatpush3.bf16.msra.mxu1 %v3064_v3  ;;  %2508 = vmatprep.mubr.msk.bf16.mxu1 %vm2978_vm0, %v2977_v0 }
 0x88c   :  { %2506 = vmatprep.subr.bf16.mxu1 %v2977_v0 }
 0x88f   :  { %2507 = vmatpush3.bf16.msra.mxu1 %v3067_v5 }
 0x890   :  { %2520 = vmatprep.subr.bf16.mxu1 %v2977_v0 }
 0x89a   :  { %v3196_v18 = vpop.permute.xlu1 %87 }
 0x89b   :  { %vm89_vm9 = vcmp.eq.s32.totalorder %v3196_v18, 1 }
 0x95d   :  { %v502_v50 = vpop.f32.mrb[8].mxu1 }
 0x95e   :  { %v508_v51 = vadd.f32 %v502_v50, %v212_v49  ;;  %v2494_v52 = vpop.f32.mrb[9].mxu1  ;;  %v220_v50 = vadd.f32 %v3089_v12, %v3156_v20 }
 0x95f   :  { %v505_v53 = vpop.f32.mrb[10].mxu1 }
 0x960   :  { %2730 = vtanh.f32 %v508_v51  ;;  %v2495_v54 = vpop.f32.mrb[11].mxu1  ;;  %v2302_v56 = vmul.f32 -1.442695, %v508_v51 }
 0x962   :  { %2732 = vpow2.f32 %v2302_v56 }
 0x96a   :  { %v2731_v55 = vpop.eup %2730 }
 0x96b   :  { %518 = vrot.lane.b32.xlu0 %v2731_v55, %s2980_s15 }
 0x96c   :  { %v2733_v58 = vpop.eup %2732 }
 0x96d   :  { %v512_v59 = vadd.f32 1.0, %v2733_v58 }
 0x96f   :  { %2734 = vrcp.f32 %v512_v59 }
 0x979   :  { %v2735_v60 = vpop.eup %2734 }
 0x97a   :  { %v516_v63 = vmul.f32 %v2735_v60, %v453_v41 }
 0x9dd   :  { %v519_v61 = vpop.permute.xlu0 %518 }
 0x9de   :  { %v521_v62 = vmul.f32 %v2735_v60, %v519_v61 }
 0x9e0   :  { %523 = vrot.lane.b32.xlu0 %v521_v62, %s2980_s15 }
 0xa52   :  { %v524_v2 = vpop.permute.xlu0 %523 }
 0xa53   :  { %v526_v4 = vadd.f32 %v524_v2, %v516_v63 }
 0xa55   :  { %v527_v6 = vsel %vm89_vm9, %v526_v4, %v453_v41 }
 0xa56   :  { %2736 = vtanh.f32 %v527_v6 }
 0xa60   :  { %v2737_v7 = vpop.eup %2736 }
 0xa61   :  { %530 = vrot.lane.b32.xlu1 %v2737_v7, %s2980_s15 }
 0xad3   :  { %v531_v8 = vpop.permute.xlu1 %530 }
 0xad4   :  { %v533_v9 = vmul.f32 %v2735_v60, %v531_v8 }
 0xad6   :  { %v3205_v10 = vsel %vm89_vm9, %v533_v9, %v3178_v45 }
 0xad7   :  { %v535_v14 = vpack.c.bf16 %v3205_v10, %v3205_v10 }
 0xad9   :  { %537 = vrot.lane.b32.xlu0 %v535_v14, %s2971_s7 }
 0xadd   :  { %93 = vperm.xlu0 %2692, %v91_v15   ;;  %v103_v15 = vsel %vm102_vm14, 1, %v2979_v1 }
 0xb4b   :  { %v538_v21 = vpop.permute.xlu0 %537 }
 0xb4c   :  { %2501 = vmatmul.mubr.msk.bf16.vlgmr.msra.gmra.mrb[12].mxu0 %vm153_vm1, %v538_v21 }
 0xb4d   :  { %2513 = vmatpush3.bf16.msra.mxu0 %v3064_v3  ;;  %2516 = vmatprep.mubr.msk.bf16.mxu0 %vm2978_vm0, %v2977_v0 }
 0xb4e   :  { %2514 = vmatprep.subr.bf16.mxu0 %v2977_v0 }
 0xb51   :  { %2515 = vmatpush3.bf16.msra.mxu0 %v3067_v5 }
 0xb5c   :  { %v3222_v17 = vpop.permute.xlu0 %93 }
 0xb5d   :  { %vm95_vm11 = vcmp.eq.s32.totalorder %v3222_v17, 1 }
 0xc1f   :  { %v576_v24 = vpop.f32.mrb[12].mxu0 }
 0xc20   :  { %v582_v25 = vadd.f32 %v576_v24, %v217_v22  ;;  %v2502_v26 = vpop.f32.mrb[13].mxu0  ;;  %v225_v22 = vadd.f32 %v3150_v16, %v3089_v12 }
 0xc21   :  { %v579_v27 = vpop.f32.mrb[14].mxu0 }
 0xc22   :  { %2738 = vtanh.f32 %v582_v25  ;;  %v2503_v28 = vpop.f32.mrb[15].mxu0  ;;  %v2304_v30 = vmul.f32 -1.442695, %v582_v25 }
 0xc24   :  { %2740 = vpow2.f32 %v2304_v30 }
 0xc2c   :  { %v2739_v29 = vpop.eup %2738 }
 0xc2d   :  { %592 = vrot.lane.b32.xlu1 %v2739_v29, %s2980_s15 }
 0xc2e   :  { %v2741_v31 = vpop.eup %2740 }
 0xc2f   :  { %v586_v33 = vadd.f32 1.0, %v2741_v31 }
 0xc31   :  { %2742 = vrcp.f32 %v586_v33 }
 0xc3b   :  { %v2743_v34 = vpop.eup %2742 }
 0xc3c   :  { %v590_v37 = vmul.f32 %v2743_v34, %v527_v6 }
 0xc9f   :  { %v593_v35 = vpop.permute.xlu1 %592 }
 0xca0   :  { %v595_v36 = vmul.f32 %v2743_v34, %v593_v35 }
 0xca2   :  { %597 = vrot.lane.b32.xlu1 %v595_v36, %s2980_s15 }
 0xd14   :  { %v598_v38 = vpop.permute.xlu1 %597 }
 0xd15   :  { %v600_v39 = vadd.f32 %v598_v38, %v590_v37 }
 0xd17   :  { %v601_v41 = vsel %vm95_vm11, %v600_v39, %v527_v6 }
 0xd18   :  { %2744 = vtanh.f32 %v601_v41 }
 0xd22   :  { %v2745_v42 = vpop.eup %2744 }
 0xd23   :  { %604 = vrot.lane.b32.xlu0 %v2745_v42, %s2980_s15  ;;  %v2698_v42 = vld [vmem:[#allocation4 + $0x10] sm:$0xff]  }
 0xd24   :  { %2528 = vmatprep.subr.bf16.mxu0 %v2698_v42 }
 0xd95   :  { %v605_v43 = vpop.permute.xlu0 %604 }
 0xd96   :  { %v607_v44 = vmul.f32 %v2743_v34, %v605_v43 }
 0xd98   :  { %v3231_v46 = vsel %vm95_vm11, %v607_v44, %v3205_v10  ;;  %v843_v44 = vpack.c.bf16 %v3143_v11, %v3113_v40  ;;  %v844_v40 = vpack.c.bf16 %v3205_v10, %v3178_v45  ;;  %v3295_v11 = vld [vmem:[#allocation6 + $0x10] sm:$0xff]   ;;  %v228_v45 = vadd.f32 %v3154_v19, %v3089_v12 }
 0xd99   :  { %v609_v47 = vpack.c.bf16 %v3231_v46, %v3231_v46 }
 0xd9b   :  { %611 = vrot.lane.b32.xlu1 %v609_v47, %s2971_s7  ;;  %v2699_v47 = vld [vmem:[#allocation4 + $0x18] sm:$0xff]  }
 0xd9f   :  { %99 = vperm.xlu1 %2693, %v97_v48  }
 0xe0d   :  { %v612_v49 = vpop.permute.xlu1 %611 }
 0xe0e   :  { %2509 = vmatmul.mubr.msk.bf16.vlgmr.msra.gmra.mrb[12].mxu1 %vm153_vm1, %v612_v49 }
 0xe0f   :  { %2521 = vmatpush3.bf16.msra.mxu1 %v3064_v3  ;;  %2524 = vmatprep.mubr.msk.bf16.mxu1 %vm2978_vm0, %v2977_v0 }
 0xe10   :  { %2522 = vmatprep.subr.bf16.mxu1 %v2977_v0 }
 0xe13   :  { %2523 = vmatpush3.bf16.msra.mxu1 %v3067_v5 }
 0xe14   :  { %2540 = vmatprep.subr.bf16.mxu1 %v2977_v0 }
 0xe1e   :  { %v3249_v20 = vpop.permute.xlu1 %99 }
 0xe1f   :  { %vm101_vm13 = vcmp.eq.s32.totalorder %v3249_v20, 1 }
 0xee1   :  { %v650_v51 = vpop.f32.mrb[12].mxu1 }
 0xee2   :  { %v656_v52 = vadd.f32 %v650_v51, %v220_v50  ;;  %v2510_v53 = vpop.f32.mrb[13].mxu1 }
 0xee3   :  { %v653_v54 = vpop.f32.mrb[14].mxu1 }
 0xee4   :  { %2746 = vtanh.f32 %v656_v52  ;;  %v2511_v55 = vpop.f32.mrb[15].mxu1  ;;  %v2306_v3 = vmul.f32 -1.442695, %v656_v52  ;;  %v3299_v54 = vld [vmem:[#allocation6 + $0x18] sm:$0xff]  }
 0xee6   :  { %2748 = vpow2.f32 %v2306_v3 }
 0xeee   :  { %v2747_v56 = vpop.eup %2746 }
 0xeef   :  { %666 = vrot.lane.b32.xlu0 %v2747_v56, %s2980_s15 }
 0xef0   :  { %v2749_v58 = vpop.eup %2748 }
 0xef1   :  { %v660_v59 = vadd.f32 1.0, %v2749_v58 }
 0xef3   :  { %2750 = vrcp.f32 %v660_v59 }
 0xefd   :  { %v2751_v5 = vpop.eup %2750 }
 0xefe   :  { %v664_v62 = vmul.f32 %v2751_v5, %v601_v41 }
 0xf61   :  { %v667_v60 = vpop.permute.xlu0 %666 }
 0xf62   :  { %v669_v61 = vmul.f32 %v2751_v5, %v667_v60 }
 0xf64   :  { %671 = vrot.lane.b32.xlu0 %v669_v61, %s2980_s15 }
 0xfd6   :  { %v672_v63 = vpop.permute.xlu0 %671 }
 0xfd7   :  { %v674_v2 = vadd.f32 %v672_v63, %v664_v62 }
 0xfd9   :  { %v675_v4 = vsel %vm101_vm13, %v674_v2, %v601_v41 }
 0xfda   :  { %2752 = vtanh.f32 %v675_v4 }
 0xfe4   :  { %v2753_v6 = vpop.eup %2752 }
 0xfe5   :  { %678 = vrot.lane.b32.xlu1 %v2753_v6, %s2980_s15 }
0x1057   :  { %v679_v7 = vpop.permute.xlu1 %678 }
0x1058   :  { %v681_v8 = vmul.f32 %v2751_v5, %v679_v7  ;;  %v3323_v5 = vld [vmem:[%s3696_s5 + $0x1] ss:$0 sm:$0xff] }
0x105a   :  { %v3258_v9 = vsel %vm101_vm13, %v681_v8, %v3231_v46 }
0x105b   :  { %v683_v14 = vpack.c.bf16 %v3258_v9, %v3258_v9 }
0x105d   :  { %685 = vrot.lane.b32.xlu0 %v683_v14, %s2971_s7 }
0x1061   :  { %105 = vperm.xlu0 %2692, %v103_v15  }
0x10cf   :  { %v686_v21 = vpop.permute.xlu0 %685 }
0x10d0   :  { %2517 = vmatmul.mubr.msk.bf16.vlgmr.msra.gmra.mrb[16].mxu0 %vm153_vm1, %v686_v21 }
0x10d1   :  { %2529 = vmatpush3.bf16.msra.mxu0 %v2698_v42 }
0x10d2   :  { %2530 = vmatprep.subr.bf16.mxu0 %v2699_v47 }
0x10d5   :  { %2531 = vmatpush3.bf16.msra.mxu0 %v2699_v47 }
0x10d6   :  { %2556 = vmatprep.subr.bf16.mxu0 %v2977_v0 }
0x10e0   :  { %v3270_v16 = vpop.permute.xlu0 %105 }
0x10e1   :  { %vm107_vm15 = vcmp.eq.s32.totalorder %v3270_v16, 1 }
0x11a3   :  { %v724_v24 = vpop.f32.mrb[16].mxu0 }
0x11a4   :  { %v730_v25 = vadd.f32 %v724_v24, %v225_v22  ;;  %v2518_v26 = vpop.f32.mrb[17].mxu0 }
0x11a5   :  { %v727_v27 = vpop.f32.mrb[18].mxu0 }
0x11a6   :  { %2754 = vtanh.f32 %v730_v25  ;;  %v2519_v28 = vpop.f32.mrb[19].mxu0  ;;  %v2308_v30 = vmul.f32 -1.442695, %v730_v25 }
0x11a8   :  { %2756 = vpow2.f32 %v2308_v30 }
0x11b0   :  { %v2755_v29 = vpop.eup %2754 }
0x11b1   :  { %740 = vrot.lane.b32.xlu1 %v2755_v29, %s2980_s15 }
0x11b2   :  { %v2757_v31 = vpop.eup %2756 }
0x11b3   :  { %v734_v33 = vadd.f32 1.0, %v2757_v31 }
0x11b5   :  { %2758 = vrcp.f32 %v734_v33  ;;  %v109_v33 = vsel %vm108_vm2, 1, %v2979_v1 }
0x11bf   :  { %v2759_v34 = vpop.eup %2758 }
0x11c0   :  { %v738_v37 = vmul.f32 %v2759_v34, %v675_v4 }
0x1223   :  { %v741_v35 = vpop.permute.xlu1 %740 }
0x1224   :  { %v743_v36 = vmul.f32 %v2759_v34, %v741_v35 }
0x1226   :  { %745 = vrot.lane.b32.xlu1 %v743_v36, %s2980_s15 }
0x1298   :  { %v746_v38 = vpop.permute.xlu1 %745 }
0x1299   :  { %v748_v39 = vadd.f32 %v746_v38, %v738_v37 }
0x129b   :  { %v3275_v41 = vsel %vm107_vm15, %v748_v39, %v675_v4 }
0x129c   :  { %2760 = vtanh.f32 %v3275_v41 }
0x12a6   :  { %v2761_v43 = vpop.eup %2760 }
0x12a7   :  { %752 = vrot.lane.b32.xlu0 %v2761_v43, %s2980_s15 }
0x12ab   :  { %857 = vrot.lane.b32.xlu0 %v843_v44, %s2971_s7 }
0x1319   :  { %v753_v48 = vpop.permute.xlu0 %752 }
0x131a   :  { %v755_v49 = vmul.f32 %v2759_v34, %v753_v48 }
0x131c   :  { %v3286_v50 = vsel %vm107_vm15, %v755_v49, %v3258_v9 }
0x131d   :  { %v858_v51 = vpop.permute.xlu0 %857  ;;  %v757_v52 = vpack.c.bf16 %v3286_v50, %v3286_v50 }
0x131e   :  { %2532 = vmatprep.mubr.msk.bf16.mxu0 %vm153_vm1, %v858_v51 }
0x131f   :  { %759 = vrot.lane.b32.xlu1 %v757_v52, %s2971_s7 }
0x1323   :  { %859 = vrot.lane.b32.xlu1 %v844_v40, %s2971_s7 }
0x1391   :  { %v760_v53 = vpop.permute.xlu1 %759 }
0x1392   :  { %2525 = vmatmul.mubr.msk.bf16.vlgmr.msra.gmra.mrb[16].mxu1 %vm153_vm1, %v760_v53 }
0x1393   :  { %2541 = vmatpush3.bf16.msra.mxu1 %v3295_v11  ;;  %2544 = vmatprep.mubr.msk.bf16.mxu1 %vm2978_vm0, %v2977_v0 }
0x1394   :  { %2542 = vmatprep.subr.bf16.mxu1 %v2977_v0 }
0x1395   :  { %v860_v55 = vpop.permute.xlu1 %859 }
0x1396   :  { %2533 = vmatmul.mubr.msk.bf16.vlgmr.msra.gmra.mrb[20].mxu0 %vm153_vm1, %v860_v55 }
0x1397   :  { %2543 = vmatpush3.bf16.msra.mxu1 %v3299_v54  ;;  %2557 = vmatpush3.bf16.msra.mxu0 %v3295_v11 }
0x1398   :  { %2548 = vmatprep.subr.bf16.mxu1 %v2977_v0  ;;  %2558 = vmatprep.subr.bf16.mxu0 %v2977_v0 }
0x139a   :  { %2545 = vmatmul.mubr.bf16.vlgmr.msra.gmra.mrb[20].mxu1 %v2979_v1 }
0x139b   :  { %2549 = vmatpush3.bf16.msra.mxu1 %v3295_v11  ;;  %2552 = vmatprep.mubr.msk.bf16.mxu1 %vm2978_vm0, %v2977_v0 }
0x139c   :  { %2550 = vmatprep.subr.bf16.mxu1 %v2977_v0  ;;  %2559 = vmatpush3.bf16.msra.mxu0 %v3299_v54 }
0x139d   :  { %2572 = vmatprep.subr.bf16.mxu0 %v2977_v0 }
0x139f   :  { %2551 = vmatpush3.bf16.msra.mxu1 %v3299_v54 }
0x13a0   :  { %2564 = vmatprep.subr.bf16.mxu1 %v2977_v0 }
0x1465   :  { %v798_v10 = vpop.f32.mrb[16].mxu1 }
0x1466   :  { %v804_v56 = vadd.f32 %v798_v10, %v228_v45  ;;  %v2526_v3 = vpop.f32.mrb[17].mxu1 }
0x1467   :  { %v801_v58 = vpop.f32.mrb[18].mxu1 }
0x1468   :  { %v2527_v59 = vpop.f32.mrb[19].mxu1  ;;  %v2310_v23 = vmul.f32 -1.442695, %v804_v56 }
0x1469   :  { %v3325_v60 = vpop.f32.mrb[20].mxu0 }
0x146a   :  { %v923_v61 = vpop.f32.mrb[21].mxu0 }
0x146b   :  { %v924_v62 = vadd.f32 %v3323_v5, %v923_v61  ;;  %v3328_v63 = vpop.f32.mrb[22].mxu0 }
0x146c   :  { %v926_v2 = vpop.f32.mrb[23].mxu0 }
0x146d   :  { %v1000_v4 = vpop.f32.mrb[20].mxu1  ;;  %v927_v42 = vadd.f32 %v3323_v5, %v926_v2 }
0x146e   :  { %v1006_v12 = vadd.f32 %v1000_v4, %v924_v62  ;;  %v2546_v19 = vpop.f32.mrb[21].mxu1 }
0x146f   :  { %v1003_v6 = vpop.f32.mrb[22].mxu1 }
0x1470   :  { %2762 = vtanh.f32 %v1006_v12  ;;  %v2547_v7 = vpop.f32.mrb[23].mxu1  ;;  %v2321_v14 = vmul.f32 -1.442695, %v1006_v12  ;;  %v845_v6 = vpack.c.bf16 %v3258_v9, %v3231_v46 }
0x1472   :  { %2764 = vpow2.f32 %v2321_v14 }
0x147a   :  { %v2763_v8 = vpop.eup %2762 }
0x147b   :  { %1016 = vrot.lane.b32.xlu0 %v2763_v8, %s2980_s15 }
0x147c   :  { %v2765_v15 = vpop.eup %2764 }
0x147d   :  { %v1010_v21 = vadd.f32 1.0, %v2765_v15 }
0x147f   :  { %2766 = vrcp.f32 %v1010_v21 }
0x1489   :  { %v2767_v22 = vpop.eup %2766 }
0x148a   :  { %v1014_v26 = vmul.f32 0.0, %v2767_v22 }
0x14ed   :  { %v1017_v24 = vpop.permute.xlu0 %1016 }
0x14ee   :  { %v1019_v25 = vmul.f32 %v2767_v22, %v1017_v24 }
0x14f0   :  { %1021 = vrot.lane.b32.xlu1 %v1019_v25, %s2980_s15 }
0x1562   :  { %v1022_v27 = vpop.permute.xlu1 %1021 }
0x1563   :  { %v1024_v28 = vadd.f32 %v1022_v27, %v1014_v26 }
0x1565   :  { %v3334_v29 = vsel %vm71_vm3, %v1024_v28, 0.0 }
0x1566   :  { %2768 = vtanh.f32 %v3334_v29 }
0x1567   :  { %2770 = vtanh.f32 %v804_v56 }
0x1568   :  { %2772 = vpow2.f32 %v2310_v23 }
0x1570   :  { %v2769_v30 = vpop.eup %2768 }
0x1571   :  { %1028 = vrot.lane.b32.xlu0 %v2769_v30, %s2980_s15  ;;  %v2771_v31 = vpop.eup %2770 }
0x1572   :  { %v2773_v39 = vpop.eup %2772 }
0x1573   :  { %v808_v44 = vadd.f32 1.0, %v2773_v39 }
0x1575   :  { %814 = vrot.lane.b32.xlu0 %v2771_v31, %s2980_s15 }
0x1579   :  { %111 = vperm.xlu0 %2692, %v109_v33  }
0x15e3   :  { %v1029_v34 = vpop.permute.xlu0 %1028 }
0x15e4   :  { %v1031_v35 = vmul.f32 %v2767_v22, %v1029_v34 }
0x15e6   :  { %v3343_v36 = vsel %vm71_vm3, %v1031_v35, 0.0  ;;  %v932_v35 = vadd.f32 %v3325_v60, %v3323_v5 }
0x15e7   :  { %v1033_v37 = vpack.c.bf16 %v3343_v36, %v3343_v36  ;;  %v815_v40 = vpop.permute.xlu0 %814 }
0x15e9   :  { %1035 = vrot.lane.b32.xlu1 %v1033_v37, %s2971_s7 }
0x15f8   :  { %v3358_v61 = vpop.permute.xlu0 %111 }
0x15f9   :  { %vm113_vm4 = vcmp.eq.s32.totalorder %v3358_v61, 1 }
0x165b   :  { %v1036_v38 = vpop.permute.xlu1 %1035 }
0x165c   :  { %2553 = vmatmul.mubr.msk.bf16.vlgmr.msra.gmra.mrb[24].mxu1 %vm153_vm1, %v1036_v38 }
0x165d   :  { %2565 = vmatpush3.bf16.msra.mxu1 %v3295_v11  ;;  %2568 = vmatprep.mubr.msk.bf16.mxu1 %vm2978_vm0, %v2977_v0 }
0x165e   :  { %2566 = vmatprep.subr.bf16.mxu1 %v2977_v0 }
0x1661   :  { %2567 = vmatpush3.bf16.msra.mxu1 %v3299_v54 }
0x1662   :  { %2580 = vmatprep.subr.bf16.mxu1 %v2977_v0 }
0x172f   :  { %v1074_v43 = vpop.f32.mrb[24].mxu1 }
0x1730   :  { %v1080_v47 = vadd.f32 %v1074_v43, %v927_v42  ;;  %v2554_v48 = vpop.f32.mrb[25].mxu1 }
0x1731   :  { %v1077_v49 = vpop.f32.mrb[26].mxu1 }
0x1732   :  { %2774 = vtanh.f32 %v1080_v47  ;;  %v2555_v51 = vpop.f32.mrb[27].mxu1  ;;  %v2323_v45 = vmul.f32 -1.442695, %v1080_v47 }
0x1733   :  { %2776 = vrcp.f32 %v808_v44 }
0x1734   :  { %2778 = vpow2.f32 %v2323_v45 }
0x173c   :  { %v2775_v52 = vpop.eup %2774 }
0x173d   :  { %1090 = vrot.lane.b32.xlu1 %v2775_v52, %s2980_s15  ;;  %v2777_v53 = vpop.eup %2776 }
0x173e   :  { %v817_v55 = vmul.f32 %v2777_v53, %v815_v40  ;;  %v2779_v10 = vpop.eup %2778  ;;  %v812_v62 = vmul.f32 %v2777_v53, %v3275_v41 }
0x173f   :  { %v1084_v56 = vadd.f32 1.0, %v2779_v10 }
0x1741   :  { %819 = vrot.lane.b32.xlu1 %v817_v55, %s2980_s15  ;;  %2780 = vrcp.f32 %v1084_v56 }
0x174b   :  { %v2781_v3 = vpop.eup %2780 }
0x174c   :  { %v1088_v7 = vmul.f32 %v2781_v3, %v3334_v29 }
0x17af   :  { %v1091_v58 = vpop.permute.xlu1 %1090 }
0x17b0   :  { %v1093_v59 = vmul.f32 %v2781_v3, %v1091_v58 }
0x17b2   :  { %1095 = vrot.lane.b32.xlu0 %v1093_v59, %s2980_s15 }
0x17b3   :  { %v820_v2 = vpop.permute.xlu1 %819 }
0x17b4   :  { %v822_v4 = vadd.f32 %v820_v2, %v812_v62  ;;  %v935_v62 = vadd.f32 %v3328_v63, %v3323_v5 }
0x17b6   :  { %v823_v12 = vsel %vm113_vm4, %v822_v4, %v3275_v41 }
0x17b7   :  { %2782 = vtanh.f32 %v823_v12 }
0x17c1   :  { %v2783_v19 = vpop.eup %2782 }
0x17c2   :  { %826 = vrot.lane.b32.xlu1 %v2783_v19, %s2980_s15 }
0x17c6   :  { %861 = vrot.lane.b32.xlu1 %v845_v6, %s2971_s7 }
0x1824   :  { %v1096_v8 = vpop.permute.xlu0 %1095 }
0x1825   :  { %v1098_v14 = vadd.f32 %v1096_v8, %v1088_v7 }
0x1827   :  { %v1099_v15 = vsel %vm77_vm5, %v1098_v14, %v3334_v29 }
0x1828   :  { %2784 = vtanh.f32 %v1099_v15 }
0x1832   :  { %v2785_v21 = vpop.eup %2784 }
0x1833   :  { %1102 = vrot.lane.b32.xlu0 %v2785_v21, %s2980_s15 }
0x1834   :  { %v827_v41 = vpop.permute.xlu1 %826 }
0x1835   :  { %v829_v22 = vmul.f32 %v2777_v53, %v827_v41 }
0x1837   :  { %v830_v46 = vsel %vm113_vm4, %v829_v22, %v3286_v50 }
0x1838   :  { %v862_v9 = vpop.permute.xlu1 %861  ;;  %v846_v24 = vpack.c.bf16 %v830_v46, %v3286_v50 }
0x1839   :  { %2536 = vmatprep.mubr.msk.bf16.mxu0 %vm153_vm1, %v862_v9 }
0x183a   :  { %863 = vrot.lane.b32.xlu0 %v846_v24, %s2971_s7 }
0x18a5   :  { %v1103_v25 = vpop.permute.xlu0 %1102 }
0x18a6   :  { %v1105_v26 = vmul.f32 %v2781_v3, %v1103_v25 }
0x18a8   :  { %v3384_v27 = vsel %vm77_vm5, %v1105_v26, %v3343_v36 }
0x18a9   :  { %v1107_v28 = vpack.c.bf16 %v3384_v27, %v3384_v27 }
0x18ab   :  { %1109 = vrot.lane.b32.xlu1 %v1107_v28, %s2971_s7 }
0x18ac   :  { %v864_v29 = vpop.permute.xlu0 %863 }
0x18ad   :  { %2537 = vmatmul.mubr.msk.bf16.gmra.mrb[24].mxu0 %vm153_vm1, %v864_v29 }
0x18ae   :  { %2560 = vmatprep.mubr.msk.bf16.mxu0 %vm2978_vm0, %v2977_v0 }
0x191d   :  { %v1110_v50 = vpop.permute.xlu1 %1109 }
0x191e   :  { %2561 = vmatmul.mubr.msk.bf16.vlgmr.msra.gmra.mrb[28].mxu0 %vm153_vm1, %v1110_v50 }
0x191f   :  { %2573 = vmatpush3.bf16.msra.mxu0 %v3295_v11  ;;  %2576 = vmatprep.mubr.msk.bf16.mxu0 %vm2978_vm0, %v2977_v0 }
0x1920   :  { %2574 = vmatprep.subr.bf16.mxu0 %v2977_v0 }
0x1923   :  { %2575 = vmatpush3.bf16.msra.mxu0 %v3299_v54 }
0x1924   :  { %2588 = vmatprep.subr.bf16.mxu0 %v2977_v0 }
0x1980   :  { %v3399_v30 = vpop.f32.mrb[24].mxu0 }
0x1981   :  { %v3401_v31 = vpop.f32.mrb[25].mxu0 }
0x1982   :  { %v3403_v33 = vpop.f32.mrb[26].mxu0 }
0x1983   :  { %v3405_v34 = vpop.f32.mrb[27].mxu0 }
0x19f1   :  { %v1148_v37 = vpop.f32.mrb[28].mxu0 }
0x19f2   :  { %v1154_v38 = vadd.f32 %v1148_v37, %v932_v35  ;;  %v2562_v23 = vpop.f32.mrb[29].mxu0  ;;  %v940_v37 = vadd.f32 %v3323_v5, %v3401_v31 }
0x19f3   :  { %v1151_v39 = vpop.f32.mrb[30].mxu0 }
0x19f4   :  { %2786 = vtanh.f32 %v1154_v38  ;;  %v2563_v42 = vpop.f32.mrb[31].mxu0  ;;  %v2325_v44 = vmul.f32 -1.442695, %v1154_v38 }
0x19f6   :  { %2788 = vpow2.f32 %v2325_v44 }
0x19fe   :  { %v2787_v43 = vpop.eup %2786 }
0x19ff   :  { %1164 = vrot.lane.b32.xlu0 %v2787_v43, %s2980_s15 }
0x1a00   :  { %v2789_v47 = vpop.eup %2788 }
0x1a01   :  { %v1158_v48 = vadd.f32 1.0, %v2789_v47 }
0x1a03   :  { %2790 = vrcp.f32 %v1158_v48 }
0x1a0d   :  { %v2791_v49 = vpop.eup %2790 }
0x1a0e   :  { %v1162_v60 = vmul.f32 %v2791_v49, %v1099_v15 }
0x1a71   :  { %v1165_v51 = vpop.permute.xlu0 %1164 }
0x1a72   :  { %v1167_v52 = vmul.f32 %v2791_v49, %v1165_v51 }
0x1a74   :  { %1169 = vrot.lane.b32.xlu1 %v1167_v52, %s2980_s15 }
0x1ae6   :  { %v1170_v40 = vpop.permute.xlu1 %1169 }
0x1ae7   :  { %v1172_v53 = vadd.f32 %v1170_v40, %v1162_v60 }
0x1ae9   :  { %v1173_v55 = vsel %vm83_vm7, %v1172_v53, %v1099_v15 }
0x1aea   :  { %2792 = vtanh.f32 %v1173_v55 }
0x1af4   :  { %v2793_v45 = vpop.eup %2792 }
0x1af5   :  { %1176 = vrot.lane.b32.xlu0 %v2793_v45, %s2980_s15 }
0x1b67   :  { %v1177_v10 = vpop.permute.xlu0 %1176 }
0x1b68   :  { %v1179_v56 = vmul.f32 %v2791_v49, %v1177_v10 }
0x1b6a   :  { %v3417_v3 = vsel %vm83_vm7, %v1179_v56, %v3384_v27 }
0x1b6b   :  { %v1181_v58 = vpack.c.bf16 %v3417_v3, %v3417_v3 }
0x1b6d   :  { %1183 = vrot.lane.b32.xlu1 %v1181_v58, %s2971_s7 }
0x1bdf   :  { %v1184_v59 = vpop.permute.xlu1 %1183 }
0x1be0   :  { %2569 = vmatmul.mubr.msk.bf16.vlgmr.msra.gmra.mrb[28].mxu1 %vm153_vm1, %v1184_v59 }
0x1be1   :  { %2581 = vmatpush3.bf16.msra.mxu1 %v3295_v11  ;;  %2584 = vmatprep.mubr.msk.bf16.mxu1 %vm2978_vm0, %v2977_v0 }
0x1be2   :  { %2582 = vmatprep.subr.bf16.mxu1 %v2977_v0 }
0x1be5   :  { %2583 = vmatpush3.bf16.msra.mxu1 %v3299_v54 }
0x1be6   :  { %2596 = vmatprep.subr.bf16.mxu1 %v2977_v0 }
0x1cb3   :  { %v1222_v2 = vpop.f32.mrb[28].mxu1 }
0x1cb4   :  { %v1228_v4 = vadd.f32 %v1222_v2, %v935_v62  ;;  %v2570_v12 = vpop.f32.mrb[29].mxu1  ;;  %v943_v2 = vadd.f32 %v3323_v5, %v3405_v34 }
0x1cb5   :  { %v1225_v19 = vpop.f32.mrb[30].mxu1 }
0x1cb6   :  { %2794 = vtanh.f32 %v1228_v4  ;;  %v2571_v6 = vpop.f32.mrb[31].mxu1  ;;  %v2327_v8 = vmul.f32 -1.442695, %v1228_v4 }
0x1cb8   :  { %2796 = vpow2.f32 %v2327_v8 }
0x1cc0   :  { %v2795_v7 = vpop.eup %2794 }
0x1cc1   :  { %1238 = vrot.lane.b32.xlu0 %v2795_v7, %s2980_s15 }
0x1cc2   :  { %v2797_v14 = vpop.eup %2796 }
0x1cc3   :  { %v1232_v15 = vadd.f32 1.0, %v2797_v14 }
0x1cc5   :  { %2798 = vrcp.f32 %v1232_v15 }
0x1ccf   :  { %v2799_v21 = vpop.eup %2798 }
0x1cd0   :  { %v1236_v63 = vmul.f32 %v2799_v21, %v1173_v55 }
0x1d33   :  { %v1239_v41 = vpop.permute.xlu0 %1238 }
0x1d34   :  { %v1241_v22 = vmul.f32 %v2799_v21, %v1239_v41 }
0x1d36   :  { %1243 = vrot.lane.b32.xlu1 %v1241_v22, %s2980_s15 }
0x1da8   :  { %v1244_v46 = vpop.permute.xlu1 %1243 }
0x1da9   :  { %v1246_v9 = vadd.f32 %v1244_v46, %v1236_v63 }
0x1dab   :  { %v1247_v24 = vsel %vm89_vm9, %v1246_v9, %v1173_v55 }
0x1dac   :  { %2800 = vtanh.f32 %v1247_v24 }
0x1db6   :  { %v2801_v25 = vpop.eup %2800 }
0x1db7   :  { %1250 = vrot.lane.b32.xlu0 %v2801_v25, %s2980_s15 }
0x1e29   :  { %v1251_v26 = vpop.permute.xlu0 %1250 }
0x1e2a   :  { %v1253_v28 = vmul.f32 %v2799_v21, %v1251_v26 }
0x1e2c   :  { %v3439_v29 = vsel %vm89_vm9, %v1253_v28, %v3417_v3 }
0x1e2d   :  { %v1255_v50 = vpack.c.bf16 %v3439_v29, %v3439_v29 }
0x1e2f   :  { %1257 = vrot.lane.b32.xlu1 %v1255_v50, %s2971_s7 }
0x1ea1   :  { %v1258_v35 = vpop.permute.xlu1 %1257 }
0x1ea2   :  { %2577 = vmatmul.mubr.msk.bf16.vlgmr.msra.gmra.mrb[32].mxu0 %vm153_vm1, %v1258_v35  ;;  %v948_v35 = vadd.f32 %v3399_v30, %v3323_v5 }
0x1ea3   :  { %2589 = vmatpush3.bf16.msra.mxu0 %v3295_v11  ;;  %2592 = vmatprep.mubr.msk.bf16.mxu0 %vm2978_vm0, %v2977_v0 }
0x1ea4   :  { %2590 = vmatprep.subr.bf16.mxu0 %v2977_v0 }
0x1ea7   :  { %2591 = vmatpush3.bf16.msra.mxu0 %v3299_v54 }
0x1f75   :  { %v1296_v38 = vpop.f32.mrb[32].mxu0 }
0x1f76   :  { %v1302_v23 = vadd.f32 %v1296_v38, %v940_v37  ;;  %v2578_v39 = vpop.f32.mrb[33].mxu0 }
0x1f77   :  { %v1299_v42 = vpop.f32.mrb[34].mxu0 }
0x1f78   :  { %2802 = vtanh.f32 %v1302_v23  ;;  %v2579_v43 = vpop.f32.mrb[35].mxu0  ;;  %v2329_v47 = vmul.f32 -1.442695, %v1302_v23 }
0x1f7a   :  { %2804 = vpow2.f32 %v2329_v47 }
0x1f82   :  { %v2803_v44 = vpop.eup %2802 }
0x1f83   :  { %1312 = vrot.lane.b32.xlu0 %v2803_v44, %s2980_s15 }
0x1f84   :  { %v2805_v48 = vpop.eup %2804 }
0x1f85   :  { %v1306_v49 = vadd.f32 1.0, %v2805_v48 }
0x1f87   :  { %2806 = vrcp.f32 %v1306_v49 }
0x1f91   :  { %v2807_v51 = vpop.eup %2806 }
0x1f92   :  { %v1310_v31 = vmul.f32 %v2807_v51, %v1247_v24 }
0x1ff5   :  { %v1313_v52 = vpop.permute.xlu0 %1312 }
0x1ff6   :  { %v1315_v60 = vmul.f32 %v2807_v51, %v1313_v52 }
0x1ff8   :  { %1317 = vrot.lane.b32.xlu1 %v1315_v60, %s2980_s15 }
0x206a   :  { %v1318_v40 = vpop.permute.xlu1 %1317 }
0x206b   :  { %v1320_v53 = vadd.f32 %v1318_v40, %v1310_v31 }
0x206d   :  { %v1321_v55 = vsel %vm95_vm11, %v1320_v53, %v1247_v24  ;;  %v2702_v53 = vld [vmem:[#allocation4 + $0x20] sm:$0xff]  }
0x206e   :  { %2808 = vtanh.f32 %v1321_v55  ;;  %2604 = vmatprep.subr.bf16.mxu0 %v2702_v53 }
0x2078   :  { %v2809_v45 = vpop.eup %2808 }
0x2079   :  { %1324 = vrot.lane.b32.xlu0 %v2809_v45, %s2980_s15  ;;  %v1563_v45 = vpack.c.bf16 %v3384_v27, %v3343_v36  ;;  %v1564_v36 = vpack.c.bf16 %v3439_v29, %v3417_v3  ;;  %v3514_v27 = vld [vmem:[#allocation6 + $0x20] sm:$0xff]   ;;  %v951_v3 = vadd.f32 %v3403_v33, %v3323_v5 }
0x20eb   :  { %v1325_v10 = vpop.permute.xlu0 %1324 }
0x20ec   :  { %v1327_v56 = vmul.f32 %v2807_v51, %v1325_v10  ;;  %v2703_v10 = vld [vmem:[#allocation4 + $0x28] sm:$0xff]  }
0x20ee   :  { %v3460_v58 = vsel %vm95_vm11, %v1327_v56, %v3439_v29 }
0x20ef   :  { %v1329_v59 = vpack.c.bf16 %v3460_v58, %v3460_v58 }
0x20f1   :  { %1331 = vrot.lane.b32.xlu1 %v1329_v59, %s2971_s7 }
0x2163   :  { %v1332_v62 = vpop.permute.xlu1 %1331 }
0x2164   :  { %2585 = vmatmul.mubr.msk.bf16.vlgmr.msra.gmra.mrb[32].mxu1 %vm153_vm1, %v1332_v62 }
0x2165   :  { %2597 = vmatpush3.bf16.msra.mxu1 %v3295_v11  ;;  %2600 = vmatprep.mubr.msk.bf16.mxu1 %vm2978_vm0, %v2977_v0 }
0x2166   :  { %2598 = vmatprep.subr.bf16.mxu1 %v2977_v0 }
0x2169   :  { %2599 = vmatpush3.bf16.msra.mxu1 %v3299_v54 }
0x216a   :  { %2616 = vmatprep.subr.bf16.mxu1 %v2977_v0 }
0x2237   :  { %v1370_v4 = vpop.f32.mrb[32].mxu1 }
0x2238   :  { %v1376_v12 = vadd.f32 %v1370_v4, %v943_v2  ;;  %v2586_v19 = vpop.f32.mrb[33].mxu1 }
0x2239   :  { %v1373_v6 = vpop.f32.mrb[34].mxu1  ;;  %v3518_v19 = vld [vmem:[#allocation6 + $0x28] sm:$0xff]  }
0x223a   :  { %2810 = vtanh.f32 %v1376_v12  ;;  %v2587_v7 = vpop.f32.mrb[35].mxu1  ;;  %v2331_v11 = vmul.f32 -1.442695, %v1376_v12 }
0x223c   :  { %2812 = vpow2.f32 %v2331_v11 }
0x2244   :  { %v2811_v8 = vpop.eup %2810 }
0x2245   :  { %1386 = vrot.lane.b32.xlu0 %v2811_v8, %s2980_s15 }
0x2246   :  { %v2813_v14 = vpop.eup %2812 }
0x2247   :  { %v1380_v15 = vadd.f32 1.0, %v2813_v14  ;;  %v3542_v14 = vld [vmem:[%s3696_s5 + $0x2] ss:$0 sm:$0xff]  ;;  %s2981_s5 = smov 96  }
0x2249   :  { %2814 = vrcp.f32 %v1380_v15 }
0x2253   :  { %v2815_v54 = vpop.eup %2814 }
0x2254   :  { %v1384_v34 = vmul.f32 %v2815_v54, %v1321_v55 }
0x22b7   :  { %v1387_v21 = vpop.permute.xlu0 %1386 }
0x22b8   :  { %v1389_v41 = vmul.f32 %v2815_v54, %v1387_v21 }
0x22ba   :  { %1391 = vrot.lane.b32.xlu1 %v1389_v41, %s2980_s15 }
0x232c   :  { %v1392_v22 = vpop.permute.xlu1 %1391 }
0x232d   :  { %v1394_v63 = vadd.f32 %v1392_v22, %v1384_v34 }
0x232f   :  { %v1395_v46 = vsel %vm101_vm13, %v1394_v63, %v1321_v55 }
0x2330   :  { %2816 = vtanh.f32 %v1395_v46 }
0x233a   :  { %v2817_v9 = vpop.eup %2816 }
0x233b   :  { %1398 = vrot.lane.b32.xlu0 %v2817_v9, %s2980_s15 }
0x23ad   :  { %v1399_v24 = vpop.permute.xlu0 %1398 }
0x23ae   :  { %v1401_v25 = vmul.f32 %v2815_v54, %v1399_v24 }
0x23b0   :  { %v3482_v26 = vsel %vm101_vm13, %v1401_v25, %v3460_v58 }
0x23b1   :  { %v1403_v28 = vpack.c.bf16 %v3482_v26, %v3482_v26 }
0x23b3   :  { %1405 = vrot.lane.b32.xlu1 %v1403_v28, %s2971_s7 }
0x2425   :  { %v1406_v50 = vpop.permute.xlu1 %1405 }
0x2426   :  { %2593 = vmatmul.mubr.msk.bf16.vlgmr.msra.gmra.mrb[36].mxu0 %vm153_vm1, %v1406_v50 }
0x2427   :  { %2605 = vmatpush3.bf16.msra.mxu0 %v2702_v53 }
0x2428   :  { %2606 = vmatprep.subr.bf16.mxu0 %v2703_v10 }
0x242b   :  { %2607 = vmatpush3.bf16.msra.mxu0 %v2703_v10 }
0x242c   :  { %2632 = vmatprep.subr.bf16.mxu0 %v2977_v0 }
0x24f9   :  { %v1444_v37 = vpop.f32.mrb[36].mxu0 }
0x24fa   :  { %v1450_v38 = vadd.f32 %v1444_v37, %v948_v35  ;;  %v2594_v23 = vpop.f32.mrb[37].mxu0 }
0x24fb   :  { %v1447_v39 = vpop.f32.mrb[38].mxu0 }
0x24fc   :  { %2818 = vtanh.f32 %v1450_v38  ;;  %v2595_v42 = vpop.f32.mrb[39].mxu0  ;;  %v2333_v44 = vmul.f32 -1.442695, %v1450_v38 }
0x24fe   :  { %2820 = vpow2.f32 %v2333_v44 }
0x2506   :  { %v2819_v43 = vpop.eup %2818 }
0x2507   :  { %1460 = vrot.lane.b32.xlu0 %v2819_v43, %s2980_s15 }
0x2508   :  { %v2821_v47 = vpop.eup %2820 }
0x2509   :  { %v1454_v48 = vadd.f32 1.0, %v2821_v47 }
0x250b   :  { %2822 = vrcp.f32 %v1454_v48 }
0x2515   :  { %v2823_v49 = vpop.eup %2822 }
0x2516   :  { %v1458_v30 = vmul.f32 %v2823_v49, %v1395_v46 }
0x2579   :  { %v1461_v51 = vpop.permute.xlu0 %1460 }
0x257a   :  { %v1463_v52 = vmul.f32 %v2823_v49, %v1461_v51 }
0x257c   :  { %1465 = vrot.lane.b32.xlu1 %v1463_v52, %s2980_s15 }
0x25ee   :  { %v1466_v60 = vpop.permute.xlu1 %1465 }
0x25ef   :  { %v1468_v31 = vadd.f32 %v1466_v60, %v1458_v30 }
0x25f1   :  { %v3494_v40 = vsel %vm107_vm15, %v1468_v31, %v1395_v46 }
0x25f2   :  { %2824 = vtanh.f32 %v3494_v40 }
0x25fc   :  { %v2825_v55 = vpop.eup %2824 }
0x25fd   :  { %1472 = vrot.lane.b32.xlu0 %v2825_v55, %s2980_s15 }
0x2601   :  { %1577 = vrot.lane.b32.xlu0 %v1563_v45, %s2971_s7 }
0x266f   :  { %v1473_v56 = vpop.permute.xlu0 %1472 }
0x2670   :  { %v1475_v59 = vmul.f32 %v2823_v49, %v1473_v56 }
0x2672   :  { %v3505_v62 = vsel %vm107_vm15, %v1475_v59, %v3482_v26 }
0x2673   :  { %v1578_v2 = vpop.permute.xlu0 %1577  ;;  %v1477_v4 = vpack.c.bf16 %v3505_v62, %v3505_v62 }
0x2674   :  { %2608 = vmatprep.mubr.msk.bf16.mxu0 %vm153_vm1, %v1578_v2 }
0x2675   :  { %1479 = vrot.lane.b32.xlu1 %v1477_v4, %s2971_s7  ;;  %v1565_v4 = vpack.c.bf16 %v3482_v26, %v3460_v58 }
0x2679   :  { %1579 = vrot.lane.b32.xlu1 %v1564_v36, %s2971_s7 }
0x26e7   :  { %v1480_v12 = vpop.permute.xlu1 %1479 }
0x26e8   :  { %2601 = vmatmul.mubr.msk.bf16.vlgmr.msra.gmra.mrb[36].mxu1 %vm153_vm1, %v1480_v12 }
0x26e9   :  { %2617 = vmatpush3.bf16.msra.mxu1 %v3514_v27  ;;  %2620 = vmatprep.mubr.msk.bf16.mxu1 %vm2978_vm0, %v2977_v0 }
0x26ea   :  { %2618 = vmatprep.subr.bf16.mxu1 %v2977_v0 }
0x26eb   :  { %v1580_v6 = vpop.permute.xlu1 %1579 }
0x26ec   :  { %2609 = vmatmul.mubr.msk.bf16.vlgmr.msra.gmra.mrb[40].mxu0 %vm153_vm1, %v1580_v6 }
0x26ed   :  { %2619 = vmatpush3.bf16.msra.mxu1 %v3518_v19  ;;  %2633 = vmatpush3.bf16.msra.mxu0 %v3514_v27 }
0x26ee   :  { %2624 = vmatprep.subr.bf16.mxu1 %v2977_v0  ;;  %2634 = vmatprep.subr.bf16.mxu0 %v2977_v0 }
0x26f0   :  { %2621 = vmatmul.mubr.bf16.vlgmr.msra.gmra.mrb[40].mxu1 %v2979_v1 }
0x26f1   :  { %2625 = vmatpush3.bf16.msra.mxu1 %v3514_v27  ;;  %2628 = vmatprep.mubr.msk.bf16.mxu1 %vm2978_vm0, %v2977_v0 }
0x26f2   :  { %2626 = vmatprep.subr.bf16.mxu1 %v2977_v0  ;;  %2635 = vmatpush3.bf16.msra.mxu0 %v3518_v19 }
0x26f3   :  { %2648 = vmatprep.subr.bf16.mxu0 %v2977_v0 }
0x26f5   :  { %2627 = vmatpush3.bf16.msra.mxu1 %v3518_v19 }
0x26f6   :  { %2640 = vmatprep.subr.bf16.mxu1 %v2977_v0 }
0x27bb   :  { %v1518_v29 = vpop.f32.mrb[36].mxu1 }
0x27bc   :  { %v1524_v1 = vadd.f32 %v1518_v29, %v951_v3  ;;  %v2602_v7 = vpop.f32.mrb[37].mxu1 }
0x27bd   :  { %v1521_v8 = vpop.f32.mrb[38].mxu1 }
0x27be   :  { %v2603_v11 = vpop.f32.mrb[39].mxu1  ;;  %v2335_v47 = vmul.f32 -1.442695, %v1524_v1 }
0x27bf   :  { %v3544_v15 = vpop.f32.mrb[40].mxu0 }
0x27c0   :  { %v1643_v54 = vpop.f32.mrb[41].mxu0 }
0x27c1   :  { %v1644_v21 = vadd.f32 %v3542_v14, %v1643_v54  ;;  %v3547_v41 = vpop.f32.mrb[42].mxu0 }
0x27c2   :  { %v1646_v34 = vpop.f32.mrb[43].mxu0  ;;  %v1655_v13 = vadd.f32 %v3547_v41, %v3542_v14 }
0x27c3   :  { %v1720_v22 = vpop.f32.mrb[40].mxu1  ;;  %v1647_v6 = vadd.f32 %v3542_v14, %v1646_v34 }
0x27c4   :  { %v1726_v5 = vadd.f32 %v1720_v22, %v1644_v21  ;;  %v2622_v33 = vpop.f32.mrb[41].mxu1 }
0x27c5   :  { %v1723_v63 = vpop.f32.mrb[42].mxu1 }
0x27c6   :  { %2826 = vtanh.f32 %v1726_v5  ;;  %v2623_v46 = vpop.f32.mrb[43].mxu1  ;;  %v2346_v24 = vmul.f32 -1.442695, %v1726_v5 }
0x27c8   :  { %2828 = vpow2.f32 %v2346_v24 }
0x27d0   :  { %v2827_v9 = vpop.eup %2826 }
0x27d1   :  { %1736 = vrot.lane.b32.xlu0 %v2827_v9, %s2980_s15 }
0x27d2   :  { %v2829_v25 = vpop.eup %2828 }
0x27d3   :  { %v1730_v28 = vadd.f32 1.0, %v2829_v25 }
0x27d5   :  { %2830 = vrcp.f32 %v1730_v28 }
0x27df   :  { %v2831_v50 = vpop.eup %2830 }
0x27e0   :  { %v1734_v38 = vmul.f32 0.0, %v2831_v50 }
0x2843   :  { %v1737_v35 = vpop.permute.xlu0 %1736 }
0x2844   :  { %v1739_v37 = vmul.f32 %v2831_v50, %v1737_v35 }
0x2846   :  { %1741 = vrot.lane.b32.xlu1 %v1739_v37, %s2980_s15 }
0x28b8   :  { %v1742_v23 = vpop.permute.xlu1 %1741 }
0x28b9   :  { %v1744_v39 = vadd.f32 %v1742_v23, %v1734_v38 }
0x28bb   :  { %v1745_v42 = vsel %vm71_vm3, %v1744_v39, 0.0 }
0x28bc   :  { %2832 = vtanh.f32 %v1745_v42 }
0x28bd   :  { %2834 = vtanh.f32 %v1524_v1 }
0x28be   :  { %2836 = vpow2.f32 %v2335_v47 }
0x28c6   :  { %v2833_v43 = vpop.eup %2832 }
0x28c7   :  { %1748 = vrot.lane.b32.xlu0 %v2833_v43, %s2980_s15  ;;  %v2835_v44 = vpop.eup %2834  ;;  %v1652_v43 = vadd.f32 %v3544_v15, %v3542_v14 }
0x28c8   :  { %v2837_v48 = vpop.eup %2836 }
0x28c9   :  { %v1528_v49 = vadd.f32 1.0, %v2837_v48 }
0x28cb   :  { %1534 = vrot.lane.b32.xlu0 %v2835_v44, %s2980_s15  ;;  %2838 = vrcp.f32 %v1528_v49 }
0x28d5   :  { %v2839_v60 = vpop.eup %2838 }
0x28d6   :  { %v1532_v10 = vmul.f32 %v2839_v60, %v3494_v40 }
0x2939   :  { %v1749_v51 = vpop.permute.xlu0 %1748 }
0x293a   :  { %v1751_v52 = vmul.f32 %v2831_v50, %v1749_v51 }
0x293c   :  { %v1752_v30 = vsel %vm71_vm3, %v1751_v52, 0.0 }
0x293d   :  { %v1535_v31 = vpop.permute.xlu0 %1534  ;;  %v1753_v53 = vpack.c.bf16 %v1752_v30, %v1752_v30 }
0x293e   :  { %v1537_v55 = vmul.f32 %v2839_v60, %v1535_v31 }
0x293f   :  { %1755 = vrot.lane.b32.xlu1 %v1753_v53, %s2971_s7 }
0x2940   :  { %1539 = vrot.lane.b32.xlu0 %v1537_v55, %s2980_s15 }
0x29b1   :  { %v1756_v45 = vpop.permute.xlu1 %1755 }
0x29b2   :  { %2629 = vmatmul.mubr.msk.bf16.vlgmr.msra.gmra.mrb[44].mxu1 %vm153_vm1, %v1756_v45  ;;  %v1540_v56 = vpop.permute.xlu0 %1539 }
0x29b3   :  { %v1542_v59 = vadd.f32 %v1540_v56, %v1532_v10  ;;  %2641 = vmatpush3.bf16.msra.mxu1 %v3514_v27  ;;  %2644 = vmatprep.mubr.msk.bf16.mxu1 %vm2978_vm0, %v2977_v0 }
0x29b4   :  { %2642 = vmatprep.subr.bf16.mxu1 %v2977_v0 }
0x29b5   :  { %v1543_v32 = vsel %vm113_vm4, %v1542_v59, %v3494_v40 }
0x29b6   :  { %2840 = vtanh.f32 %v1543_v32 }
0x29b7   :  { %2643 = vmatpush3.bf16.msra.mxu1 %v3518_v19 }
0x29b8   :  { %2656 = vmatprep.subr.bf16.mxu1 %v2977_v0 }
0x29c0   :  { %v2841_v2 = vpop.eup %2840 }
0x29c1   :  { %1546 = vrot.lane.b32.xlu0 %v2841_v2, %s2980_s15 }
0x29c5   :  { %1581 = vrot.lane.b32.xlu0 %v1565_v4, %s2971_s7 }
0x2a33   :  { %v1547_v36 = vpop.permute.xlu0 %1546 }
0x2a34   :  { %v1549_v46 = vmul.f32 %v2839_v60, %v1547_v36 }
0x2a36   :  { %v1550_v24 = vsel %vm113_vm4, %v1549_v46, %v3505_v62 }
0x2a37   :  { %v1582_v12 = vpop.permute.xlu0 %1581  ;;  %v1566_v25 = vpack.c.bf16 %v1550_v24, %v3505_v62 }
0x2a38   :  { %2612 = vmatprep.mubr.msk.bf16.mxu0 %vm153_vm1, %v1582_v12 }
0x2a85   :  { %v1794_v40 = vpop.f32.mrb[44].mxu1 }
0x2a86   :  { %v1800_v3 = vadd.f32 %v1794_v40, %v1647_v6  ;;  %v2630_v29 = vpop.f32.mrb[45].mxu1 }
0x2a87   :  { %v1797_v1 = vpop.f32.mrb[46].mxu1 }
0x2a88   :  { %2842 = vtanh.f32 %v1800_v3  ;;  %v2631_v7 = vpop.f32.mrb[47].mxu1  ;;  %v2348_v11 = vmul.f32 -1.442695, %v1800_v3 }
0x2a8a   :  { %2844 = vpow2.f32 %v2348_v11 }
0x2a92   :  { %v2843_v8 = vpop.eup %2842 }
0x2a93   :  { %1810 = vrot.lane.b32.xlu1 %v2843_v8, %s2980_s15 }
0x2a94   :  { %v2845_v58 = vpop.eup %2844 }
0x2a95   :  { %v1804_v26 = vadd.f32 1.0, %v2845_v58 }
0x2a97   :  { %2846 = vrcp.f32 %v1804_v26 }
0x2aa1   :  { %v2847_v54 = vpop.eup %2846 }
0x2aa2   :  { %v1808_v34 = vmul.f32 %v2847_v54, %v1745_v42 }
0x2b05   :  { %v1811_v21 = vpop.permute.xlu1 %1810 }
0x2b06   :  { %v1813_v22 = vmul.f32 %v2847_v54, %v1811_v21 }
0x2b08   :  { %1815 = vrot.lane.b32.xlu1 %v1813_v22, %s2980_s15 }
0x2b7a   :  { %v1816_v5 = vpop.permute.xlu1 %1815 }
0x2b7b   :  { %v1818_v33 = vadd.f32 %v1816_v5, %v1808_v34 }
0x2b7d   :  { %v1819_v63 = vsel %vm77_vm5, %v1818_v33, %v1745_v42 }
0x2b7e   :  { %2848 = vtanh.f32 %v1819_v63 }
0x2b88   :  { %v2849_v9 = vpop.eup %2848 }
0x2b89   :  { %1822 = vrot.lane.b32.xlu1 %v2849_v9, %s2980_s15 }
0x2b8d   :  { %1583 = vrot.lane.b32.xlu1 %v1566_v25, %s2971_s7 }
0x2bfb   :  { %v1823_v28 = vpop.permute.xlu1 %1822 }
0x2bfc   :  { %v1825_v50 = vmul.f32 %v2847_v54, %v1823_v28 }
0x2bfe   :  { %v1826_v35 = vsel %vm77_vm5, %v1825_v50, %v1752_v30 }
0x2bff   :  { %v1584_v37 = vpop.permute.xlu1 %1583  ;;  %v1827_v38 = vpack.c.bf16 %v1826_v35, %v1826_v35 }
0x2c00   :  { %2613 = vmatmul.mubr.msk.bf16.gmra.mrb[44].mxu0 %vm153_vm1, %v1584_v37 }
0x2c01   :  { %1829 = vrot.lane.b32.xlu0 %v1827_v38, %s2971_s7  ;;  %2636 = vmatprep.mubr.msk.bf16.mxu0 %vm2978_vm0, %v2977_v0 }
0x2c73   :  { %v1830_v23 = vpop.permute.xlu0 %1829 }
0x2c74   :  { %2637 = vmatmul.mubr.msk.bf16.vlgmr.msra.gmra.mrb[48].mxu0 %vm153_vm1, %v1830_v23 }
0x2c75   :  { %2649 = vmatpush3.bf16.msra.mxu0 %v3514_v27  ;;  %2652 = vmatprep.mubr.msk.bf16.mxu0 %vm2978_vm0, %v2977_v0 }
0x2c76   :  { %2650 = vmatprep.subr.bf16.mxu0 %v2977_v0 }
0x2c79   :  { %2651 = vmatpush3.bf16.msra.mxu0 %v3518_v19 }
0x2c7a   :  { %2664 = vmatprep.subr.bf16.mxu0 %v2977_v0 }
0x2cd3   :  { %v3599_v57 = vpop.f32.mrb[44].mxu0 }
0x2cd4   :  { %v3601_v62 = vpop.f32.mrb[45].mxu0 }
0x2cd5   :  { %v3603_v39 = vpop.f32.mrb[46].mxu0  ;;  %v1660_v50 = vadd.f32 %v3542_v14, %v3601_v62 }
0x2cd6   :  { %v3605_v42 = vpop.f32.mrb[47].mxu0 }
0x2d47   :  { %v1868_v44 = vpop.f32.mrb[48].mxu0 }
0x2d48   :  { %v1874_v47 = vadd.f32 %v1868_v44, %v1652_v43  ;;  %v2638_v48 = vpop.f32.mrb[49].mxu0 }
0x2d49   :  { %v1871_v49 = vpop.f32.mrb[50].mxu0 }
0x2d4a   :  { %2850 = vtanh.f32 %v1874_v47  ;;  %v2639_v51 = vpop.f32.mrb[51].mxu0  ;;  %v2350_v30 = vmul.f32 -1.442695, %v1874_v47 }
0x2d4c   :  { %2852 = vpow2.f32 %v2350_v30 }
0x2d54   :  { %v2851_v52 = vpop.eup %2850 }
0x2d55   :  { %1884 = vrot.lane.b32.xlu1 %v2851_v52, %s2980_s15 }
0x2d56   :  { %v2853_v60 = vpop.eup %2852 }
0x2d57   :  { %v1878_v31 = vadd.f32 1.0, %v2853_v60 }
0x2d59   :  { %2854 = vrcp.f32 %v1878_v31 }
0x2d63   :  { %v2855_v53 = vpop.eup %2854 }
0x2d64   :  { %v1882_v15 = vmul.f32 %v2855_v53, %v1819_v63 }
0x2dc7   :  { %v1885_v55 = vpop.permute.xlu1 %1884 }
0x2dc8   :  { %v1887_v45 = vmul.f32 %v2855_v53, %v1885_v55 }
0x2dca   :  { %1889 = vrot.lane.b32.xlu0 %v1887_v45, %s2980_s15 }
0x2e3c   :  { %v1890_v10 = vpop.permute.xlu0 %1889 }
0x2e3d   :  { %v1892_v56 = vadd.f32 %v1890_v10, %v1882_v15 }
0x2e3f   :  { %v1893_v59 = vsel %vm83_vm7, %v1892_v56, %v1819_v63 }
0x2e40   :  { %2856 = vtanh.f32 %v1893_v59 }
0x2e4a   :  { %v2857_v32 = vpop.eup %2856 }
0x2e4b   :  { %1896 = vrot.lane.b32.xlu1 %v2857_v32, %s2980_s15 }
0x2ebd   :  { %v1897_v2 = vpop.permute.xlu1 %1896 }
0x2ebe   :  { %v1899_v4 = vmul.f32 %v2855_v53, %v1897_v2 }
0x2ec0   :  { %v1900_v36 = vsel %vm83_vm7, %v1899_v4, %v1826_v35 }
0x2ec1   :  { %v1901_v12 = vpack.c.bf16 %v1900_v36, %v1900_v36 }
0x2ec3   :  { %1903 = vrot.lane.b32.xlu0 %v1901_v12, %s2971_s7 }
0x2f35   :  { %v1904_v6 = vpop.permute.xlu0 %1903 }
0x2f36   :  { %2645 = vmatmul.mubr.msk.bf16.vlgmr.msra.gmra.mrb[48].mxu1 %vm153_vm1, %v1904_v6 }
0x2f37   :  { %2657 = vmatpush3.bf16.msra.mxu1 %v3514_v27  ;;  %2660 = vmatprep.mubr.msk.bf16.mxu1 %vm2978_vm0, %v2977_v0 }
0x2f38   :  { %2658 = vmatprep.subr.bf16.mxu1 %v2977_v0 }
0x2f3b   :  { %2659 = vmatpush3.bf16.msra.mxu1 %v3518_v19 }
0x2f3c   :  { %2672 = vmatprep.subr.bf16.mxu1 %v2977_v0 }
0x3009   :  { %v1942_v40 = vpop.f32.mrb[48].mxu1 }
0x300a   :  { %v1948_v3 = vadd.f32 %v1942_v40, %v1655_v13  ;;  %v2646_v29 = vpop.f32.mrb[49].mxu1 }
0x300b   :  { %v1945_v1 = vpop.f32.mrb[50].mxu1 }
0x300c   :  { %2858 = vtanh.f32 %v1948_v3  ;;  %v2647_v7 = vpop.f32.mrb[51].mxu1  ;;  %v2352_v11 = vmul.f32 -1.442695, %v1948_v3 }
0x300e   :  { %2860 = vpow2.f32 %v2352_v11 }
0x3016   :  { %v2859_v8 = vpop.eup %2858 }
0x3017   :  { %1958 = vrot.lane.b32.xlu1 %v2859_v8, %s2980_s15 }
0x3018   :  { %v2861_v58 = vpop.eup %2860 }
0x3019   :  { %v1952_v26 = vadd.f32 1.0, %v2861_v58 }
0x301b   :  { %2862 = vrcp.f32 %v1952_v26 }
0x3025   :  { %v2863_v54 = vpop.eup %2862 }
0x3026   :  { %v1956_v41 = vmul.f32 %v2863_v54, %v1893_v59 }
0x3089   :  { %v1959_v21 = vpop.permute.xlu1 %1958 }
0x308a   :  { %v1961_v22 = vmul.f32 %v2863_v54, %v1959_v21  ;;  %v1668_v21 = vadd.f32 %v3599_v57, %v3542_v14 }
0x308c   :  { %1963 = vrot.lane.b32.xlu0 %v1961_v22, %s2980_s15 }
0x30fe   :  { %v1964_v34 = vpop.permute.xlu0 %1963 }
0x30ff   :  { %v1966_v5 = vadd.f32 %v1964_v34, %v1956_v41 }
0x3101   :  { %v1967_v33 = vsel %vm89_vm9, %v1966_v5, %v1893_v59  ;;  %v1663_v59 = vadd.f32 %v3542_v14, %v3605_v42 }
0x3102   :  { %2864 = vtanh.f32 %v1967_v33 }
0x310c   :  { %v2865_v63 = vpop.eup %2864 }
0x310d   :  { %1970 = vrot.lane.b32.xlu1 %v2865_v63, %s2980_s15 }
0x317f   :  { %v1971_v46 = vpop.permute.xlu1 %1970 }
0x3180   :  { %v1973_v9 = vmul.f32 %v2863_v54, %v1971_v46 }
0x3182   :  { %v1974_v24 = vsel %vm89_vm9, %v1973_v9, %v1900_v36 }
0x3183   :  { %v1975_v25 = vpack.c.bf16 %v1974_v24, %v1974_v24 }
0x3185   :  { %1977 = vrot.lane.b32.xlu0 %v1975_v25, %s2971_s7 }
0x31f7   :  { %v1978_v28 = vpop.permute.xlu0 %1977 }
0x31f8   :  { %2653 = vmatmul.mubr.msk.bf16.vlgmr.msra.gmra.mrb[52].mxu0 %vm153_vm1, %v1978_v28 }
0x31f9   :  { %2665 = vmatpush3.bf16.msra.mxu0 %v3514_v27  ;;  %2668 = vmatprep.mubr.msk.bf16.mxu0 %vm2978_vm0, %v2977_v0 }
0x31fa   :  { %2666 = vmatprep.subr.bf16.mxu0 %v2977_v0 }
0x31fd   :  { %2667 = vmatpush3.bf16.msra.mxu0 %v3518_v19 }
0x32cb   :  { %v2016_v18 = vpop.f32.mrb[52].mxu0 }
0x32cc   :  { %v2022_v35 = vadd.f32 %v2016_v18, %v1660_v50  ;;  %v2654_v37 = vpop.f32.mrb[53].mxu0 }
0x32cd   :  { %v2019_v38 = vpop.f32.mrb[54].mxu0 }
0x32ce   :  { %2866 = vtanh.f32 %v2022_v35  ;;  %v2655_v23 = vpop.f32.mrb[55].mxu0  ;;  %v2354_v44 = vmul.f32 -1.442695, %v2022_v35 }
0x32d0   :  { %2868 = vpow2.f32 %v2354_v44 }
0x32d8   :  { %v2867_v43 = vpop.eup %2866 }
0x32d9   :  { %2032 = vrot.lane.b32.xlu1 %v2867_v43, %s2980_s15 }
0x32da   :  { %v2869_v47 = vpop.eup %2868 }
0x32db   :  { %v2026_v48 = vadd.f32 1.0, %v2869_v47 }
0x32dd   :  { %2870 = vrcp.f32 %v2026_v48  ;;  %v1671_v48 = vadd.f32 %v3603_v39, %v3542_v14 }
0x32e7   :  { %v2871_v49 = vpop.eup %2870 }
0x32e8   :  { %v2030_v62 = vmul.f32 %v2871_v49, %v1967_v33 }
0x334b   :  { %v2033_v51 = vpop.permute.xlu1 %2032 }
0x334c   :  { %v2035_v52 = vmul.f32 %v2871_v49, %v2033_v51 }
0x334e   :  { %2037 = vrot.lane.b32.xlu0 %v2035_v52, %s2980_s15 }
0x33c0   :  { %v2038_v30 = vpop.permute.xlu0 %2037 }
0x33c1   :  { %v2040_v60 = vadd.f32 %v2038_v30, %v2030_v62 }
0x33c3   :  { %v2041_v31 = vsel %vm95_vm11, %v2040_v60, %v1967_v33 }
0x33c4   :  { %2872 = vtanh.f32 %v2041_v31 }
0x33ce   :  { %v2873_v53 = vpop.eup %2872 }
0x33cf   :  { %2044 = vrot.lane.b32.xlu1 %v2873_v53, %s2980_s15 }
0x3441   :  { %v2045_v55 = vpop.permute.xlu1 %2044 }
0x3442   :  { %v2047_v45 = vmul.f32 %v2871_v49, %v2045_v55 }
0x3444   :  { %v2048_v15 = vsel %vm95_vm11, %v2047_v45, %v1974_v24 }
0x3445   :  { %v2049_v10 = vpack.c.bf16 %v2048_v15, %v2048_v15 }
0x3447   :  { %2051 = vrot.lane.b32.xlu0 %v2049_v10, %s2971_s7 }
0x34b9   :  { %v2052_v56 = vpop.permute.xlu0 %2051 }
0x34ba   :  { %2661 = vmatmul.mubr.msk.bf16.vlgmr.msra.gmra.mrb[52].mxu1 %vm153_vm1, %v2052_v56 }
0x34bb   :  { %2673 = vmatpush3.bf16.msra.mxu1 %v3514_v27  ;;  %2676 = vmatprep.mubr.msk.bf16.mxu1 %vm2978_vm0, %v2977_v0  ;;  %vm2279_vm0 = vcmask 7168  }
0x34bc   :  { %2674 = vmatprep.subr.bf16.mxu1 %v2977_v0 }
0x34bf   :  { %2675 = vmatpush3.bf16.msra.mxu1 %v3518_v19 }
0x358d   :  { %v2090_v17 = vpop.f32.mrb[52].mxu1 }
0x358e   :  { %v2096_v32 = vadd.f32 %v2090_v17, %v1663_v59  ;;  %v2662_v2 = vpop.f32.mrb[53].mxu1  ;;  %v2264_v59 = vld [vmem:[%s3693_s2] sm:$0xff] }
0x358f   :  { %v2093_v4 = vpop.f32.mrb[54].mxu1 }
0x3590   :  { %2874 = vtanh.f32 %v2096_v32  ;;  %v2663_v36 = vpop.f32.mrb[55].mxu1  ;;  %v2356_v27 = vmul.f32 -1.442695, %v2096_v32 }
0x3592   :  { %2876 = vpow2.f32 %v2356_v27 }
0x359a   :  { %v2875_v12 = vpop.eup %2874 }
0x359b   :  { %2106 = vrot.lane.b32.xlu1 %v2875_v12, %s2980_s15 }
0x359c   :  { %v2877_v6 = vpop.eup %2876 }
0x359d   :  { %v2100_v13 = vadd.f32 1.0, %v2877_v6 }
0x359f   :  { %2878 = vrcp.f32 %v2100_v13 }
0x35a9   :  { %v2879_v0 = vpop.eup %2878 }
0x35aa   :  { %v2104_v42 = vmul.f32 %v2879_v0, %v2041_v31 }
0x360d   :  { %v2107_v40 = vpop.permute.xlu1 %2106 }
0x360e   :  { %v2109_v19 = vmul.f32 %v2879_v0, %v2107_v40 }
0x3610   :  { %2111 = vrot.lane.b32.xlu0 %v2109_v19, %s2980_s15 }
0x3682   :  { %v2112_v3 = vpop.permute.xlu0 %2111 }
0x3683   :  { %v2114_v29 = vadd.f32 %v2112_v3, %v2104_v42 }
0x3685   :  { %v2115_v1 = vsel %vm101_vm13, %v2114_v29, %v2041_v31 }
0x3686   :  { %2880 = vtanh.f32 %v2115_v1 }
0x3690   :  { %v2881_v7 = vpop.eup %2880 }
0x3691   :  { %2118 = vrot.lane.b32.xlu1 %v2881_v7, %s2980_s15 }
0x3703   :  { %v2119_v8 = vpop.permute.xlu1 %2118 }
0x3704   :  { %v2121_v11 = vmul.f32 %v2879_v0, %v2119_v8 }
0x3706   :  { %v2122_v58 = vsel %vm101_vm13, %v2121_v11, %v2048_v15 }
0x3707   :  { %v2123_v26 = vpack.c.bf16 %v2122_v58, %v2122_v58 }
0x3709   :  { %2125 = vrot.lane.b32.xlu0 %v2123_v26, %s2971_s7 }
0x377b   :  { %v2126_v54 = vpop.permute.xlu0 %2125 }
0x377c   :  { %2669 = vmatmul.mubr.msk.bf16.vlgmr.msra.gmra.mrb[56].mxu0 %vm153_vm1, %v2126_v54 }
0x384f   :  { %v2164_v22 = vpop.f32.mrb[56].mxu0 }
0x3850   :  { %v2170_v41 = vadd.f32 %v2164_v22, %v1668_v21  ;;  %v2670_v34 = vpop.f32.mrb[57].mxu0 }
0x3851   :  { %v2167_v5 = vpop.f32.mrb[58].mxu0 }
0x3852   :  { %2882 = vtanh.f32 %v2170_v41  ;;  %v2671_v33 = vpop.f32.mrb[59].mxu0  ;;  %v2358_v20 = vmul.f32 -1.442695, %v2170_v41 }
0x3854   :  { %2884 = vpow2.f32 %v2358_v20 }
0x385c   :  { %v2883_v63 = vpop.eup %2882 }
0x385d   :  { %2180 = vrot.lane.b32.xlu1 %v2883_v63, %s2980_s15 }
0x385e   :  { %v2885_v46 = vpop.eup %2884 }
0x385f   :  { %v2174_v9 = vadd.f32 1.0, %v2885_v46 }
0x3861   :  { %2886 = vrcp.f32 %v2174_v9 }
0x386b   :  { %v2887_v24 = vpop.eup %2886 }
0x386c   :  { %v2178_v57 = vmul.f32 %v2887_v24, %v2115_v1 }
0x38cf   :  { %v2181_v25 = vpop.permute.xlu1 %2180 }
0x38d0   :  { %v2183_v28 = vmul.f32 %v2887_v24, %v2181_v25 }
0x38d2   :  { %2185 = vrot.lane.b32.xlu0 %v2183_v28, %s2980_s15 }
0x3944   :  { %v2186_v50 = vpop.permute.xlu0 %2185 }
0x3945   :  { %v2188_v18 = vadd.f32 %v2186_v50, %v2178_v57 }
0x3947   :  { %v2189_v35 = vsel %vm107_vm15, %v2188_v18, %v2115_v1 }
0x3948   :  { %2888 = vtanh.f32 %v2189_v35 }
0x3952   :  { %v2889_v37 = vpop.eup %2888 }
0x3953   :  { %2192 = vrot.lane.b32.xlu1 %v2889_v37, %s2980_s15 }
0x39c5   :  { %v2193_v38 = vpop.permute.xlu1 %2192 }
0x39c6   :  { %v2195_v23 = vmul.f32 %v2887_v24, %v2193_v38 }
0x39c8   :  { %v2196_v43 = vsel %vm107_vm15, %v2195_v23, %v2122_v58 }
0x39c9   :  { %v2197_v44 = vpack.c.bf16 %v2196_v43, %v2196_v43 }
0x39cb   :  { %2199 = vrot.lane.b32.xlu0 %v2197_v44, %s2971_s7 }
0x3a3d   :  { %v2200_v47 = vpop.permute.xlu0 %2199 }
0x3a3e   :  { %2677 = vmatmul.mubr.msk.bf16.vlgmr.msra.gmra.mrb[56].mxu1 %vm153_vm1, %v2200_v47 }
0x3b11   :  { %v2238_v49 = vpop.f32.mrb[56].mxu1 }
0x3b12   :  { %v2244_v51 = vadd.f32 %v2238_v49, %v1671_v48  ;;  %v2678_v52 = vpop.f32.mrb[57].mxu1 }
0x3b13   :  { %v2241_v62 = vpop.f32.mrb[58].mxu1 }
0x3b14   :  { %2890 = vtanh.f32 %v2244_v51  ;;  %v2679_v30 = vpop.f32.mrb[59].mxu1  ;;  %v2360_v16 = vmul.f32 -1.442695, %v2244_v51 }
0x3b16   :  { %2892 = vpow2.f32 %v2360_v16 }
0x3b1e   :  { %v2891_v60 = vpop.eup %2890 }
0x3b1f   :  { %2254 = vrot.lane.b32.xlu1 %v2891_v60, %s2980_s15 }
0x3b20   :  { %v2893_v31 = vpop.eup %2892 }
0x3b21   :  { %v2248_v53 = vadd.f32 1.0, %v2893_v31 }
0x3b23   :  { %2894 = vrcp.f32 %v2248_v53 }
0x3b2d   :  { %v2895_v55 = vpop.eup %2894 }
0x3b2e   :  { %v2252_v14 = vmul.f32 %v2895_v55, %v2189_v35 }
0x3b91   :  { %v2255_v45 = vpop.permute.xlu1 %2254 }
0x3b92   :  { %v2257_v15 = vmul.f32 %v2895_v55, %v2255_v45 }
0x3b94   :  { %2259 = vrot.lane.b32.xlu0 %v2257_v15, %s2980_s15 }
0x3c06   :  { %v2260_v39 = vpop.permute.xlu0 %2259 }
0x3c07   :  { %v2262_v10 = vadd.f32 %v2260_v39, %v2252_v14 }
0x3c09   :  { %v2263_v56 = vsel %vm113_vm4, %v2262_v10, %v2189_v35 }
0x3c0a   :  { %2266 = vrot.lane.b32.xlu1 %v2263_v56, %s2981_s5 }
0x3c7c   :  { %v2267_v17 = vpop.permute.xlu1 %2266 }
0x3c7d   :  { %v2269_v32 = vmul.f32 %v2267_v17, %v2264_v59 }
0x3c7f   :  { %v2270_v2 = vsel %vm153_vm1, %v2269_v32, 0.0 }
0x3c80   :  { %2271 = vadd.xlane.f32.xlu0 %v2270_v2 }
0x3d0d   :  { %v2272_v4 = vpop.xlane.xlu0 %2271 }
0x3d0e   :  { %v2361_v36 = vmul.f32 -1.442695, %v2272_v4 }
0x3d10   :  { %2896 = vpow2.f32 %v2361_v36 }
0x3d1a   :  { %v2897_v12 = vpop.eup %2896 }
0x3d1b   :  { %v2276_v27 = vadd.f32 1.0, %v2897_v12 }
0x3d1d   :  { %2898 = vrcp.f32 %v2276_v27 }
0x3d27   :  { %v2899_v61 = vpop.eup %2898 }
0x3d28   :  { %2280 = vst.msk [vmem:[%s3697_s6] sm:$0xff] %vm2279_vm0, %v2899_v61 }
0x3d29   :  { %2285 = vsyncpa [#allocation3], 1 }
0x3d2a   :  { %2286 = vsyncpa [#allocation5], 1 }

</bundles_post_ra>
